<compile_context>
chip_gen: v5e
topology: v5e:2x2
jax: 0.10.0
libtpu: 0.0.40
codegen_flags: <defaults>
</compile_context>

<pallas_src>
import math

import jax
import jax.numpy as jnp
from jax.experimental import pallas as pl
from jax.experimental.pallas import tpu as pltpu


def _mlp_kernel(e1_ref, e2_ref, w1a_ref, w1b_ref, b1_ref,
                w2_ref, b2_ref, w3_ref, b3_ref, o_ref):
    # Layer 1: Linear(2E -> 100) on the concatenated embedding, + ReLU.
    # concat(e1, e2) @ W1 == e1 @ W1[:E] + e2 @ W1[E:]  (exact).
    h1 = (jnp.dot(e1_ref[...], w1a_ref[...], preferred_element_type=jnp.float32)
          + jnp.dot(e2_ref[...], w1b_ref[...], preferred_element_type=jnp.float32)
          + b1_ref[...])
    h1 = jnp.maximum(h1, 0.0)
    # Layer 2: Linear(100 -> 50) + ReLU.
    h2 = jnp.dot(h1, w2_ref[...], preferred_element_type=jnp.float32) + b2_ref[...]
    h2 = jnp.maximum(h2, 0.0)
    # Layer 3: Linear(50 -> 1)  (padded to 128 output lanes; column 0 is real).
    h3 = jnp.dot(h2, w3_ref[...], preferred_element_type=jnp.float32) + b3_ref[...]
    # Lane-dense writeback: transpose on the XLU (otherwise idle) and keep only
    # the real output column, stored as a (1, tm) row.
    o_ref[...] = jnp.transpose(h3)[0:1, :]


def _round_up(x, m):
    return ((x + m - 1) // m) * m


def _pick_tm(n):
    # Big batch tiles amortize the fixed per-grid-step pipeline overhead and
    # keep the MXU streaming many LHS rows per resident weight set; keep at
    # least 2 grid steps when possible so v7x's two TensorCores both get work.
    if n >= 1024:
        return 512
    if n > 128:
        # lane-dense (1, tm) output blocks need tm % 128 == 0 when grid > 1.
        return _round_up(pl.cdiv(n, 2), 128)
    # Single grid step: tm equals the (sublane-rounded) batch.
    return _round_up(max(n, 1), 8)


def simple_concat_forward(embed1, embed2, params, *, tm=None):
    """Pallas forward for SimpleConcat. Returns shape (N,) float32."""
    w1a, w1b, b1, w2, b2, w3, b3 = params
    N, E = embed1.shape
    H1 = w1a.shape[1]   # padded 128
    H2 = w2.shape[1]    # padded 128
    HO = w3.shape[1]    # padded 128

    if tm is None:
        tm = _pick_tm(N)
    n_pad = _round_up(N, tm)
    if n_pad != N:
        pad = ((0, n_pad - N), (0, 0))
        embed1 = jnp.pad(embed1, pad)
        embed2 = jnp.pad(embed2, pad)

    grid = (n_pad // tm,)

    # Grid-invariant weights/biases: constant index_map -> DMA'd once and kept
    # resident in VMEM; single-buffered to skip the redundant second copy.
    def resident(shape):
        return pl.BlockSpec(shape, lambda i: (0, 0),
                            pipeline_mode=pl.Buffered(1))

    out = pl.pallas_call(
        _mlp_kernel,
        out_shape=jax.ShapeDtypeStruct((1, n_pad), jnp.float32),
        grid_spec=pltpu.PrefetchScalarGridSpec(
            num_scalar_prefetch=0,
            grid=grid,
            in_specs=[
                pl.BlockSpec((tm, E), lambda i: (i, 0)),   # embed1 tile
                pl.BlockSpec((tm, E), lambda i: (i, 0)),   # embed2 tile
                resident((E, H1)),                         # W1 top half  (for embed1)
                resident((E, H1)),                         # W1 bottom    (for embed2)
                resident((1, H1)),                         # b1
                resident((H1, H2)),                        # W2
                resident((1, H2)),                         # b2
                resident((H2, HO)),                        # W3
                resident((1, HO)),                         # b3
            ],
            out_specs=pl.BlockSpec((1, tm), lambda i: (0, i)),
        ),
        compiler_params=pltpu.CompilerParams(
            dimension_semantics=("parallel",)),
    )(embed1, embed2, w1a, w1b, b1, w2, b2, w3, b3)

    # torch.squeeze(x, 1): the single output row is already the (N,) vector.
    return out.reshape(-1)[:N]


def _xavier_uniform(key, fan_in, fan_out):
    bound = math.sqrt(6.0 / (fan_in + fan_out))
    return jax.random.uniform(key, (fan_in, fan_out), jnp.float32, -bound, bound)


def init_params(key, embed_dim, *, pad=128):
    """Deterministic params matching the PyTorch __init__ (xavier_uniform
    weights, biases filled with 0.01), zero-padded to lane-dense shapes."""
    k1, k2, k3 = jax.random.split(key, 3)
    E = embed_dim

    w1 = _xavier_uniform(k1, 2 * E, 100)          # Linear(2E, 100)
    b1 = jnp.full((100,), 0.01, jnp.float32)
    w2 = _xavier_uniform(k2, 100, 50)             # Linear(100, 50)
    b2 = jnp.full((50,), 0.01, jnp.float32)
    w3 = _xavier_uniform(k3, 50, 1)               # Linear(50, 1)
    b3 = jnp.full((1,), 0.01, jnp.float32)

    def pad_cols(w, n):
        return jnp.pad(w, ((0, 0), (0, n - w.shape[1])))

    def pad_rows(w, n):
        return jnp.pad(w, ((0, n - w.shape[0]), (0, 0)))

    w1a = pad_cols(w1[:E], pad)                   # (E, 128)
    w1b = pad_cols(w1[E:], pad)                   # (E, 128)
    b1p = jnp.pad(b1, (0, pad - 100)).reshape(1, pad)
    w2p = pad_cols(pad_rows(w2, pad), pad)        # (128, 128)
    b2p = jnp.pad(b2, (0, pad - 50)).reshape(1, pad)
    w3p = pad_cols(pad_rows(w3, pad), pad)        # (128, 128), real data in [:50, :1]
    b3p = jnp.pad(b3, (0, pad - 1)).reshape(1, pad)

    unpadded = (w1, b1, w2, b2, w3, b3)
    padded = (w1a, w1b, b1p, w2p, b2p, w3p, b3p)
    return padded, unpadded


def reference_forward(embed1, embed2, unpadded):
    """Pure-JAX reference matching the PyTorch forward exactly."""
    w1, b1, w2, b2, w3, b3 = unpadded
    x = jnp.concatenate((embed1, embed2), axis=1)
    x = jnp.maximum(x @ w1 + b1, 0.0)
    x = jnp.maximum(x @ w2 + b2, 0.0)
    x = x @ w3 + b3
    return jnp.squeeze(x, axis=1)


if __name__ == "__main__":
    key = jax.random.PRNGKey(0)
    k_p, k_e1, k_e2 = jax.random.split(key, 3)

    embed_dim = 16
    params, unpadded = init_params(k_p, embed_dim)

    # Main config: 2 grid steps of tm=512 (exercises the lane-dense, big-tile path).
    batch = 1024
    embed1 = jax.random.normal(k_e1, (batch, embed_dim), jnp.float32)
    embed2 = jax.random.normal(k_e2, (batch, embed_dim), jnp.float32)

    out = simple_concat_forward(embed1, embed2, params)
    out = jax.block_until_ready(out)
    ref = reference_forward(embed1, embed2, unpadded)
    assert out.shape == (batch,)
    assert jnp.allclose(out, ref, atol=1e-5, rtol=1e-5), (out, ref)

    # Ragged batch: exercises wrapper-side padding (tm=256, n_pad=512) + slice.
    batch2 = 300
    e1b = embed1[:batch2]
    e2b = embed2[:batch2]
    out2 = jax.block_until_ready(simple_concat_forward(e1b, e2b, params))
    ref2 = reference_forward(e1b, e2b, unpadded)
    assert out2.shape == (batch2,)
    assert jnp.allclose(out2, ref2, atol=1e-5, rtol=1e-5), (out2, ref2)

    print("KERNEL_OK")
</pallas_src>

<mosaic_0001>
module attributes {stable_mosaic.version = 11 : i64} {
  func.func @_mlp_kernel(%arg0: i32, %arg1: memref<512x16xf32, #tpu.memory_space<vmem>>, %arg2: memref<512x16xf32, #tpu.memory_space<vmem>>, %arg3: memref<16x128xf32, #tpu.memory_space<vmem>>, %arg4: memref<16x128xf32, #tpu.memory_space<vmem>>, %arg5: memref<1x128xf32, #tpu.memory_space<vmem>>, %arg6: memref<128x128xf32, #tpu.memory_space<vmem>>, %arg7: memref<1x128xf32, #tpu.memory_space<vmem>>, %arg8: memref<128x128xf32, #tpu.memory_space<vmem>>, %arg9: memref<1x128xf32, #tpu.memory_space<vmem>>, %arg10: memref<1x512xf32, #tpu.memory_space<vmem>>) attributes {dimension_semantics = [#tpu.dimension_semantics<parallel>], iteration_bounds = array<i64: 2>, scalar_prefetch = 0 : i64, scratch_operands = 0 : i64, tpu.core_type = #tpu.core_type<tc>, window_params = [{transform_indices = @transform_0, window_bounds = array<i64: 512, 16>}, {transform_indices = @transform_1, window_bounds = array<i64: 512, 16>}, {pipeline_mode = #tpu.pipeline_mode<synchronous>, transform_indices = @transform_2, window_bounds = array<i64: 16, 128>}, {pipeline_mode = #tpu.pipeline_mode<synchronous>, transform_indices = @transform_3, window_bounds = array<i64: 16, 128>}, {pipeline_mode = #tpu.pipeline_mode<synchronous>, transform_indices = @transform_4, window_bounds = array<i64: 1, 128>}, {pipeline_mode = #tpu.pipeline_mode<synchronous>, transform_indices = @transform_5, window_bounds = array<i64: 128, 128>}, {pipeline_mode = #tpu.pipeline_mode<synchronous>, transform_indices = @transform_6, window_bounds = array<i64: 1, 128>}, {pipeline_mode = #tpu.pipeline_mode<synchronous>, transform_indices = @transform_7, window_bounds = array<i64: 128, 128>}, {pipeline_mode = #tpu.pipeline_mode<synchronous>, transform_indices = @transform_8, window_bounds = array<i64: 1, 128>}, {transform_indices = @transform_9, window_bounds = array<i64: 1, 512>}]} {
    %c0 = arith.constant 0 : index
    %c0_0 = arith.constant 0 : index
    %0 = vector.load %arg1[%c0, %c0_0] : memref<512x16xf32, #tpu.memory_space<vmem>>, vector<512x16xf32>
    %c0_1 = arith.constant 0 : index
    %c0_2 = arith.constant 0 : index
    %1 = vector.load %arg3[%c0_1, %c0_2] : memref<16x128xf32, #tpu.memory_space<vmem>>, vector<16x128xf32>
    %cst = arith.constant dense<0.000000e+00> : vector<512x128xf32>
    %2 = tpu.matmul %0, %1, %cst {dimension_numbers = #tpu.dot_dimension_numbers<[1], [0], [0], [1], [0, 0, 1, 1], [], []>} : vector<512x16xf32>, vector<16x128xf32>, vector<512x128xf32> -> vector<512x128xf32>
    %c0_3 = arith.constant 0 : index
    %c0_4 = arith.constant 0 : index
    %3 = vector.load %arg2[%c0_3, %c0_4] : memref<512x16xf32, #tpu.memory_space<vmem>>, vector<512x16xf32>
    %c0_5 = arith.constant 0 : index
    %c0_6 = arith.constant 0 : index
    %4 = vector.load %arg4[%c0_5, %c0_6] : memref<16x128xf32, #tpu.memory_space<vmem>>, vector<16x128xf32>
    %cst_7 = arith.constant dense<0.000000e+00> : vector<512x128xf32>
    %5 = tpu.matmul %3, %4, %cst_7 {dimension_numbers = #tpu.dot_dimension_numbers<[1], [0], [0], [1], [0, 0, 1, 1], [], []>} : vector<512x16xf32>, vector<16x128xf32>, vector<512x128xf32> -> vector<512x128xf32>
    %6 = arith.addf %2, %5 : vector<512x128xf32>
    %c0_8 = arith.constant 0 : index
    %c0_9 = arith.constant 0 : index
    %7 = vector.load %arg5[%c0_8, %c0_9] : memref<1x128xf32, #tpu.memory_space<vmem>>, vector<1x128xf32>
    %8 = vector.broadcast %7 : vector<1x128xf32> to vector<512x128xf32>
    %9 = arith.addf %6, %8 : vector<512x128xf32>
    %cst_10 = arith.constant 0.000000e+00 : f32
    %10 = vector.broadcast %cst_10 : f32 to vector<512x128xf32>
    %11 = arith.maximumf %9, %10 : vector<512x128xf32>
    %c0_11 = arith.constant 0 : index
    %c0_12 = arith.constant 0 : index
    %12 = vector.load %arg6[%c0_11, %c0_12] : memref<128x128xf32, #tpu.memory_space<vmem>>, vector<128x128xf32>
    %cst_13 = arith.constant dense<0.000000e+00> : vector<512x128xf32>
    %13 = tpu.matmul %11, %12, %cst_13 {dimension_numbers = #tpu.dot_dimension_numbers<[1], [0], [0], [1], [0, 0, 1, 1], [], []>} : vector<512x128xf32>, vector<128x128xf32>, vector<512x128xf32> -> vector<512x128xf32>
    %c0_14 = arith.constant 0 : index
    %c0_15 = arith.constant 0 : index
    %14 = vector.load %arg7[%c0_14, %c0_15] : memref<1x128xf32, #tpu.memory_space<vmem>>, vector<1x128xf32>
    %15 = vector.broadcast %14 : vector<1x128xf32> to vector<512x128xf32>
    %16 = arith.addf %13, %15 : vector<512x128xf32>
    %cst_16 = arith.constant 0.000000e+00 : f32
    %17 = vector.broadcast %cst_16 : f32 to vector<512x128xf32>
    %18 = arith.maximumf %16, %17 : vector<512x128xf32>
    %c0_17 = arith.constant 0 : index
    %c0_18 = arith.constant 0 : index
    %19 = vector.load %arg8[%c0_17, %c0_18] : memref<128x128xf32, #tpu.memory_space<vmem>>, vector<128x128xf32>
    %cst_19 = arith.constant dense<0.000000e+00> : vector<512x128xf32>
    %20 = tpu.matmul %18, %19, %cst_19 {dimension_numbers = #tpu.dot_dimension_numbers<[1], [0], [0], [1], [0, 0, 1, 1], [], []>} : vector<512x128xf32>, vector<128x128xf32>, vector<512x128xf32> -> vector<512x128xf32>
    %c0_20 = arith.constant 0 : index
    %c0_21 = arith.constant 0 : index
    %21 = vector.load %arg9[%c0_20, %c0_21] : memref<1x128xf32, #tpu.memory_space<vmem>>, vector<1x128xf32>
    %22 = vector.broadcast %21 : vector<1x128xf32> to vector<512x128xf32>
    %23 = arith.addf %20, %22 : vector<512x128xf32>
    %24 = tpu.transpose %23, [1, 0] : vector<512x128xf32> -> vector<128x512xf32>
    %25 = vector.extract_strided_slice %24 {offsets = [0, 0], sizes = [1, 512], strides = [1, 1]} : vector<128x512xf32> to vector<1x512xf32>
    %c0_22 = arith.constant 0 : index
    %c0_23 = arith.constant 0 : index
    %26 = vector.load %arg10[%c0_22, %c0_23] : memref<1x512xf32, #tpu.memory_space<vmem>>, vector<1x512xf32>
    tpu.vector_store %arg10[%c0_22, %c0_23], %25 {strides = array<i32>} : memref<1x512xf32, #tpu.memory_space<vmem>>, vector<1x512xf32>,
    return
  }
  func.func @transform_0(%arg0: i32) -> (i32, i32) {
    %c0_i32 = arith.constant 0 : i32
    %c0_i32_0 = arith.constant 0 : i32
    return %arg0, %c0_i32 : i32, i32
  }
  func.func @transform_1(%arg0: i32) -> (i32, i32) {
    %c0_i32 = arith.constant 0 : i32
    %c0_i32_0 = arith.constant 0 : i32
    return %arg0, %c0_i32 : i32, i32
  }
  func.func @transform_2(%arg0: i32) -> (i32, i32) {
    %c0_i32 = arith.constant 0 : i32
    %c0_i32_0 = arith.constant 0 : i32
    %c0_i32_1 = arith.constant 0 : i32
    return %c0_i32, %c0_i32_0 : i32, i32
  }
  func.func @transform_3(%arg0: i32) -> (i32, i32) {
    %c0_i32 = arith.constant 0 : i32
    %c0_i32_0 = arith.constant 0 : i32
    %c0_i32_1 = arith.constant 0 : i32
    return %c0_i32, %c0_i32_0 : i32, i32
  }
  func.func @transform_4(%arg0: i32) -> (i32, i32) {
    %c0_i32 = arith.constant 0 : i32
    %c0_i32_0 = arith.constant 0 : i32
    %c0_i32_1 = arith.constant 0 : i32
    return %c0_i32, %c0_i32_0 : i32, i32
  }
  func.func @transform_5(%arg0: i32) -> (i32, i32) {
    %c0_i32 = arith.constant 0 : i32
    %c0_i32_0 = arith.constant 0 : i32
    %c0_i32_1 = arith.constant 0 : i32
    return %c0_i32, %c0_i32_0 : i32, i32
  }
  func.func @transform_6(%arg0: i32) -> (i32, i32) {
    %c0_i32 = arith.constant 0 : i32
    %c0_i32_0 = arith.constant 0 : i32
    %c0_i32_1 = arith.constant 0 : i32
    return %c0_i32, %c0_i32_0 : i32, i32
  }
  func.func @transform_7(%arg0: i32) -> (i32, i32) {
    %c0_i32 = arith.constant 0 : i32
    %c0_i32_0 = arith.constant 0 : i32
    %c0_i32_1 = arith.constant 0 : i32
    return %c0_i32, %c0_i32_0 : i32, i32
  }
  func.func @transform_8(%arg0: i32) -> (i32, i32) {
    %c0_i32 = arith.constant 0 : i32
    %c0_i32_0 = arith.constant 0 : i32
    %c0_i32_1 = arith.constant 0 : i32
    return %c0_i32, %c0_i32_0 : i32, i32
  }
  func.func @transform_9(%arg0: i32) -> (i32, i32) {
    %c0_i32 = arith.constant 0 : i32
    %c0_i32_0 = arith.constant 0 : i32
    return %c0_i32, %arg0 : i32, i32
  }
}

</mosaic_0001>

<bundles_post_ra>
// kernel: tpu_custom_call.1
= control target key start
LH: loop header
LB: loop body
LE: loop exit
PB: predicated region body
PF: predicated region fallthrough
CT: control target
= control target key end

     0   :  { %14 = vsyncpa [#allocation3], 0  ;;  %s3233_s0 = inlined_call_operand.vmem [shape: f32[1024,16], index: 0, kind: input, shape index: {}]   ;;  %s3234_s1 = inlined_call_operand.vmem [shape: f32[1024,16], index: 1, kind: input, shape index: {}]   ;;  %s3235_s2 = inlined_call_operand.vmem [shape: f32[16,128], index: 2, kind: input, shape index: {}]   ;;  %s3236_s3 = inlined_call_operand.vmem [shape: f32[16,128], index: 3, kind: input, shape index: {}]   ;;  %s3237_s4 = inlined_call_operand.vmem [shape: f32[1,128], index: 4, kind: input, shape index: {}]   ;;  %s3238_s5 = inlined_call_operand.vmem [shape: f32[128,128], index: 5, kind: input, shape index: {}]   ;;  %s3239_s6 = inlined_call_operand.vmem [shape: f32[1,128], index: 6, kind: input, shape index: {}]   ;;  %s3240_s7 = inlined_call_operand.vmem [shape: f32[128,128], index: 7, kind: input, shape index: {}]   ;;  %s3241_s8 = inlined_call_operand.vmem [shape: f32[1,128], index: 8, kind: input, shape index: {}]   ;;  %s3242_s9 = inlined_call_operand.hbm [shape: f32[1,1024], index: 9, kind: output, shape index: {}]  }
   0x1   :  { %16 = vsyncpa [#allocation3 + $0x1], 0  ;;  %s2510_s30 = smov 0   ;;  %s2512_s10 = smov 0  }
   0x2   :  { %s2514_s11 = smov 0   ;;  %s2516_s12 = smov 0  }
   0x3 LB: > { %s2531_s13 = sadd.s32 4294967295, %s2458_s12   ;;  %s2179_s14 = sadd.s32 4294967294, %s2458_s12   ;;  %s2458_s12 = sphi %s2516_s12, %s3248_s12   ;;  %s2454_s11 = sphi %s2514_s11, %s3247_s11   ;;  %s2450_s10 = sphi %s2512_s10, %s3246_s10   ;;  %s2446_s30 = sphi %s2510_s30, %s3245_s30  }
   0x4   : > { %s2535_s15 = sadd.s32 1, %s2458_s12   ;;  %s228_s16 = sadd.s32 1, %s2454_s11 }
   0x5   : > { %s225_s17 = ssub.s32 %s2458_s12, %s2535_s15  ;;  %p238_p0 = scmp.ne.s32.totalorder %s2454_s11, %s2450_s10 }
   0x6   : > { %p226_p1 = scmp.eq.s32.totalorder %s225_s17, 0  ;;  %p239_p2 = scmp.eq.s32.totalorder %s2531_s13, 1 }
   0x7   : > { %p244_p3 = scmp.ne.s32.totalorder %s2450_s10, %s2446_s30  ;;  %p245_p4 = scmp.eq.s32.totalorder %s2179_s14, 1 }
   0x8   : > { %s2546_s18 = scalar_select %p226_p1, %s2454_s11, %s228_s16  }
   0x9   : > { %p2548_p5 = por %p239_p2, %p238_p0  ;;  %p2552_p6 = por %p245_p4, %p244_p3 }
   0xa   : > { %p2182_p7 = scmp.ge.s32.totalorder %s2458_s12, 1  ;;  %p302_p8 = scmp.lt.s32.totalorder %s2458_s12, 3 }
   0xc   : > { %p303_p9 = pnand %p2182_p7, %p302_p8 }
   0xd   : > { %s2184_s27 = sshll.u32 (!%p303_p9), %s2531_s13, 6  ;;  %s2317_s29 = sshll.u32 (!%p303_p9), %s2531_s13, 2 }
   0xe   : > { %306 = sbr.rel (%p303_p9) target bundleno = 1093 (0x445), region = 56  ;;  %p344_p10 = scmp.lt.s32.totalorder (!%p303_p9), %s2184_s27, 127 }
  0x13   : > { %v487_v0 = vld [vmem:[%s3236_s3 + $0x8] sm:$0xff]  ;;  %v486_v2 = vld [vmem:[%s3236_s3] sm:$0xff]  ;;  %v1438_v4 = vld [vmem:[%s3238_s5 + $0x78] sm:$0xff]  ;;  %s3250_s27 = smov (!%p344_p10, %s2184_s27), 127  ;;  %vm488_vm0 = vcmask 130048   ;;  %vm2080_vm1 = vcmask 1040384  }
  0x14   : > { %v421_v1 = vld [vmem:[%s3235_s2 + $0x8] sm:$0xff]  ;;  %695 = vmatpush.msra.mxu0 %v487_v0  ;;  %v420_v3 = vld [vmem:[%s3235_s2] sm:$0xff]  ;;  %2320 = vmatpush.msra.mxu2 %v1438_v4  ;;  %s2185_s17 = sshll.u32 %s3250_s27, 3  ;;  %v1437_v7 = vld [vmem:[%s3238_s5 + $0x70] sm:$0xff]  ;;  %s340_s27 = sand.u32 1, %s2450_s10   ;;  %vm2082_vm2 = vcmask 1042434  }
  0x15   : > { %1096 = vmatpush.msra.mxu1 %v421_v1  ;;  %s2577_s23 = scalar_lea.vmem %s3234_s1, %s2185_s17  ;;  %s2582_s26 = scalar_lea.vmem %s3233_s0, %s2185_s17  ;;  %v1436_v16 = vld [vmem:[%s3238_s5 + $0x68] sm:$0xff]  ;;  %v1435_v25 = vld [vmem:[%s3238_s5 + $0x60] sm:$0xff]  ;;  %v1434_v30 = vld [vmem:[%s3238_s5 + $0x58] sm:$0xff]  ;;  %vm2084_vm3 = vcmask 1041408  }
  0x16   : > { %696 = vmatpush.msra.mxu0 %v486_v2  ;;  %v422_v5 = vld [vmem:[%s2577_s23] sm:$0xff]  ;;  %2321 = vmatpush.msra.mxu2 %v1437_v7  ;;  %v423_v8 = vld [vmem:[%s2577_s23 + $0x8] sm:$0xff]  ;;  %v424_v10 = vld [vmem:[%s2577_s23 + $0x10] sm:$0xff]  ;;  %s2183_s28 = sshll.u32 %s340_s27, 2  ;;  %s2103_s17 = scalar_lea.hbm %s3242_s9, %s2317_s29 }
  0x17   : > { %1097 = vmatpush.msra.mxu1 %v420_v3  ;;  %v356_v6 = vld [vmem:[%s2582_s26] sm:$0xff]  ;;  %2188 = vmatmul.msk.f32.vlgmr.msra.gmra.mxu0 %vm488_vm0, %v422_v5  ;;  %v357_v9 = vld [vmem:[%s2582_s26 + $0x8] sm:$0xff]  ;;  %v358_v11 = vld [vmem:[%s2582_s26 + $0x10] sm:$0xff]  ;;  %s342_s21 = scalar_lea.vmem [#allocation2], %s2183_s28  ;;  %s2093_s13 = scalar_lea.sflag [#allocation3], %s340_s27 }
  0x18   : > { %1443 = vmatpush.msrb.mxu0 %v1438_v4  ;;  %2252 = vmatmul.msk.f32.vlgmr.msra.gmra.mxu1 %vm488_vm0, %v356_v6  ;;  %v425_v12 = vld [vmem:[%s2577_s23 + $0x18] sm:$0xff]  ;;  %v426_v14 = vld [vmem:[%s2577_s23 + $0x20] sm:$0xff]  ;;  %v427_v17 = vld [vmem:[%s2577_s23 + $0x28] sm:$0xff]  ;;  %s2105_s22 = sshll.u32 %s342_s21, 4  ;;  %s2416_s29 = scalar_lea.hbm %s3242_s9, 8  ;;  %s2106_s22 = int_to_ptr.vmem [resolvable:$true] %s2105_s22 }
  0x19   : > { %v359_v13 = vld [vmem:[%s2582_s26 + $0x18] sm:$0xff]  ;;  %v360_v15 = vld [vmem:[%s2582_s26 + $0x20] sm:$0xff]  ;;  %2322 = vmatpush.msra.mxu2 %v1436_v16  ;;  %v361_v18 = vld [vmem:[%s2582_s26 + $0x28] sm:$0xff] }
  0x1a   : > { %1444 = vmatpush.msrb.mxu0 %v1437_v7  ;;  %v428_v19 = vld [vmem:[%s2577_s23 + $0x30] sm:$0xff]  ;;  %v429_v21 = vld [vmem:[%s2577_s23 + $0x38] sm:$0xff]  ;;  %v430_v23 = vld [vmem:[%s2577_s23 + $0x40] sm:$0xff] }
  0x1b   : > { %v362_v20 = vld [vmem:[%s2582_s26 + $0x30] sm:$0xff]  ;;  %v363_v22 = vld [vmem:[%s2582_s26 + $0x38] sm:$0xff]  ;;  %v364_v24 = vld [vmem:[%s2582_s26 + $0x40] sm:$0xff]  ;;  %2323 = vmatpush.msra.mxu2 %v1435_v25 }
  0x1c   : > { %1445 = vmatpush.msrb.mxu0 %v1436_v16  ;;  %v431_v26 = vld [vmem:[%s2577_s23 + $0x48] sm:$0xff]  ;;  %v432_v28 = vld [vmem:[%s2577_s23 + $0x50] sm:$0xff]  ;;  %v433_v32 = vld [vmem:[%s2577_s23 + $0x58] sm:$0xff] }
  0x1d   : > { %v365_v27 = vld [vmem:[%s2582_s26 + $0x48] sm:$0xff]  ;;  %v366_v29 = vld [vmem:[%s2582_s26 + $0x50] sm:$0xff]  ;;  %2324 = vmatpush.msra.mxu2 %v1434_v30  ;;  %v367_v33 = vld [vmem:[%s2582_s26 + $0x58] sm:$0xff] }
  0x1e   : > { %1446 = vmatpush.msrb.mxu0 %v1435_v25  ;;  %v1433_v31 = vld [vmem:[%s3238_s5 + $0x50] sm:$0xff]  ;;  %v1432_v34 = vld [vmem:[%s3238_s5 + $0x48] sm:$0xff]  ;;  %v1431_v35 = vld [vmem:[%s3238_s5 + $0x40] sm:$0xff] }
  0x1f   : > { %2189 = vmatmul.msk.f32.gmra.mxu0 %vm488_vm0, %v423_v8  ;;  %2325 = vmatpush.msra.mxu2 %v1433_v31  ;;  %v1430_v36 = vld [vmem:[%s3238_s5 + $0x38] sm:$0xff]  ;;  %v434_v37 = vld [vmem:[%s2577_s23 + $0x60] sm:$0xff]  ;;  %v1429_v39 = vld [vmem:[%s3238_s5 + $0x30] sm:$0xff] }
  0x20   : > { %2253 = vmatmul.msk.f32.gmra.mxu1 %vm488_vm0, %v357_v9  ;;  %1447 = vmatpush.msrb.mxu0 %v1434_v30  ;;  %v368_v38 = vld [vmem:[%s2582_s26 + $0x60] sm:$0xff]  ;;  %v1428_v40 = vld [vmem:[%s3238_s5 + $0x28] sm:$0xff]  ;;  %v1731_v41 = vld [vmem:[%s3240_s7 + $0x78] sm:$0xff] }
  0x21   : > { %2326 = vmatpush.msra.mxu2 %v1432_v34  ;;  %v1427_v42 = vld [vmem:[%s3238_s5 + $0x20] sm:$0xff]  ;;  %1736 = vmatpush.msrb.mxu1 %v1731_v41  ;;  %v1426_v43 = vld [vmem:[%s3238_s5 + $0x18] sm:$0xff]  ;;  %v435_v44 = vld [vmem:[%s2577_s23 + $0x68] sm:$0xff] }
  0x22   : > { %1448 = vmatpush.msrb.mxu0 %v1433_v31  ;;  %2336 = vmatpush.msra.mxu3 %v1731_v41  ;;  %v369_v45 = vld [vmem:[%s2582_s26 + $0x68] sm:$0xff]  ;;  %v1425_v46 = vld [vmem:[%s3238_s5 + $0x10] sm:$0xff]  ;;  %v1423_v48 = vld [vmem:[%s3238_s5] sm:$0xff] }
  0x23   : > { %2327 = vmatpush.msra.mxu2 %v1431_v35  ;;  %v1424_v47 = vld [vmem:[%s3238_s5 + $0x8] sm:$0xff]  ;;  %v436_v49 = vld [vmem:[%s2577_s23 + $0x70] sm:$0xff]  ;;  %v437_v51 = vld [vmem:[%s2577_s23 + $0x78] sm:$0xff] }
  0x24   : > { %1449 = vmatpush.msrb.mxu0 %v1432_v34  ;;  %v370_v50 = vld [vmem:[%s2582_s26 + $0x70] sm:$0xff]  ;;  %v371_v52 = vld [vmem:[%s2582_s26 + $0x78] sm:$0xff]  ;;  %v438_v55 = vld [vmem:[%s2577_s23 + $0x80] sm:$0xff] }
  0x25   : > { %2328 = vmatpush.msra.mxu2 %v1430_v36  ;;  %v372_v56 = vld [vmem:[%s2582_s26 + $0x80] sm:$0xff]  ;;  %v1730_v57 = vld [vmem:[%s3240_s7 + $0x70] sm:$0xff]  ;;  %v439_v60 = vld [vmem:[%s2577_s23 + $0x88] sm:$0xff] }
  0x26   : > { %1450 = vmatpush.msrb.mxu0 %v1431_v35  ;;  %1737 = vmatpush.msrb.mxu1 %v1730_v57  ;;  %v373_v61 = vld [vmem:[%s2582_s26 + $0x88] sm:$0xff]  ;;  %v2712_v62 = vld [vmem:[%s3237_s4] ss:$0 sm:$0xff]  ;;  %v440_v4 = vld [vmem:[%s2577_s23 + $0x90] sm:$0xff] }
  0x27   : > { %2190 = vmatmul.msk.f32.gmra.mxu0 %vm488_vm0, %v424_v10  ;;  %2329 = vmatpush.msra.mxu2 %v1429_v39  ;;  %v374_v5 = vld [vmem:[%s2582_s26 + $0x90] sm:$0xff]  ;;  %v379_v41 = vld [vmem:[%s2582_s26 + $0xb8] sm:$0xff] }
  0x28   : > { %2254 = vmatmul.msk.f32.gmra.mxu1 %vm488_vm0, %v358_v11  ;;  %1451 = vmatpush.msrb.mxu0 %v1430_v36  ;;  %v441_v11 = vld [vmem:[%s2577_s23 + $0x98] sm:$0xff]  ;;  %v378_v34 = vld [vmem:[%s2582_s26 + $0xb0] sm:$0xff] }
  0x29   : > { %2330 = vmatpush.msra.mxu2 %v1428_v40  ;;  %2337 = vmatpush.msra.mxu3 %v1730_v57  ;;  %v447_v57 = vld [vmem:[%s2577_s23 + $0xc8] sm:$0xff] }
  0x2a   : > { %1452 = vmatpush.msrb.mxu0 %v1429_v39 }
  0x2b   : > { %2331 = vmatpush.msra.mxu2 %v1427_v42 }
  0x2c   : > { %1453 = vmatpush.msrb.mxu0 %v1428_v40  ;;  %v445_v40 = vld [vmem:[%s2577_s23 + $0xb8] sm:$0xff] }
  0x2d   : > { %2332 = vmatpush.msra.mxu2 %v1426_v43 }
  0x2e   : > { %1454 = vmatpush.msrb.mxu0 %v1427_v42 }
  0x2f   : > { %2191 = vmatmul.msk.f32.gmra.mxu0 %vm488_vm0, %v425_v12  ;;  %2333 = vmatpush.msra.mxu2 %v1425_v46  ;;  %v375_v12 = vld [vmem:[%s2582_s26 + $0x98] sm:$0xff] }
  0x30   : > { %2255 = vmatmul.msk.f32.gmra.mxu1 %vm488_vm0, %v359_v13  ;;  %1455 = vmatpush.msrb.mxu0 %v1426_v43 }
  0x31   : > { %2334 = vmatpush.msra.mxu2 %v1424_v47 }
  0x32   : > { %1456 = vmatpush.msrb.mxu0 %v1425_v46 }
  0x33   : > { %2335 = vmatpush.msra.mxu2 %v1423_v48 }
  0x34   : > { %1457 = vmatpush.msrb.mxu0 %v1424_v47  ;;  %v446_v47 = vld [vmem:[%s2577_s23 + $0xc0] sm:$0xff] }
  0x36   : > { %1458 = vmatpush.msrb.mxu0 %v1423_v48  ;;  %v380_v48 = vld [vmem:[%s2582_s26 + $0xc0] sm:$0xff] }
  0x37   : > { %2192 = vmatmul.msk.f32.gmra.mxu0 %vm488_vm0, %v426_v14 }
  0x38   : > { %2256 = vmatmul.msk.f32.gmra.mxu1 %vm488_vm0, %v360_v15 }
  0x3f   : > { %2193 = vmatmul.msk.f32.gmra.mxu0 %vm488_vm0, %v427_v17 }
  0x40   : > { %2257 = vmatmul.msk.f32.gmra.mxu1 %vm488_vm0, %v361_v18  ;;  %v442_v18 = vld [vmem:[%s2577_s23 + $0xa0] sm:$0xff] }
  0x47   : > { %2194 = vmatmul.msk.f32.gmra.mxu0 %vm488_vm0, %v428_v19  ;;  %v376_v19 = vld [vmem:[%s2582_s26 + $0xa0] sm:$0xff] }
  0x48   : > { %2258 = vmatmul.msk.f32.gmra.mxu1 %vm488_vm0, %v362_v20 }
  0x4f   : > { %2195 = vmatmul.msk.f32.gmra.mxu0 %vm488_vm0, %v429_v21 }
  0x50   : > { %2259 = vmatmul.msk.f32.gmra.mxu1 %vm488_vm0, %v363_v22  ;;  %v1729_v22 = vld [vmem:[%s3240_s7 + $0x68] sm:$0xff] }
  0x51   : > { %1738 = vmatpush.msrb.mxu1 %v1729_v22  ;;  %2338 = vmatpush.msra.mxu3 %v1729_v22  ;;  %v1724_v22 = vld [vmem:[%s3240_s7 + $0x40] sm:$0xff] }
  0x57   : > { %2196 = vmatmul.msk.f32.gmra.mxu0 %vm488_vm0, %v430_v23 }
  0x58   : > { %2260 = vmatmul.msk.f32.gmra.mxu1 %vm488_vm0, %v364_v24 }
  0x5f   : > { %2197 = vmatmul.msk.f32.gmra.mxu0 %vm488_vm0, %v431_v26  ;;  %v443_v26 = vld [vmem:[%s2577_s23 + $0xa8] sm:$0xff] }
  0x60   : > { %2261 = vmatmul.msk.f32.gmra.mxu1 %vm488_vm0, %v365_v27  ;;  %v377_v27 = vld [vmem:[%s2582_s26 + $0xa8] sm:$0xff] }
  0x67   : > { %2198 = vmatmul.msk.f32.gmra.mxu0 %vm488_vm0, %v432_v28 }
  0x68   : > { %2262 = vmatmul.msk.f32.gmra.mxu1 %vm488_vm0, %v366_v29 }
  0x6f   : > { %2199 = vmatmul.msk.f32.gmra.mxu0 %vm488_vm0, %v433_v32 }
  0x70   : > { %2263 = vmatmul.msk.f32.gmra.mxu1 %vm488_vm0, %v367_v33  ;;  %v444_v33 = vld [vmem:[%s2577_s23 + $0xb0] sm:$0xff] }
  0x77   : > { %2200 = vmatmul.msk.f32.gmra.mxu0 %vm488_vm0, %v434_v37 }
  0x78   : > { %2264 = vmatmul.msk.f32.gmra.mxu1 %vm488_vm0, %v368_v38 }
  0x7f   : > { %2201 = vmatmul.msk.f32.gmra.mxu0 %vm488_vm0, %v435_v44 }
  0x80   : > { %2265 = vmatmul.msk.f32.gmra.mxu1 %vm488_vm0, %v369_v45 }
  0x87   : > { %2202 = vmatmul.msk.f32.gmra.mxu0 %vm488_vm0, %v436_v49 }
  0x88   : > { %2266 = vmatmul.msk.f32.gmra.mxu1 %vm488_vm0, %v370_v50 }
  0x8f   : > { %2203 = vmatmul.msk.f32.gmra.mxu0 %vm488_vm0, %v437_v51  ;;  %v1728_v51 = vld [vmem:[%s3240_s7 + $0x60] sm:$0xff] }
  0x90   : > { %2267 = vmatmul.msk.f32.gmra.mxu1 %vm488_vm0, %v371_v52  ;;  %2339 = vmatpush.msra.mxu3 %v1728_v51 }
  0x91   : > { %1739 = vmatpush.msrb.mxu1 %v1728_v51 }
  0x94   : > { %v2696_v53 = vpop.f32.mrf.mxu0 }
  0x95   : > { %v2698_v54 = vpop.f32.mrf.mxu1 }
  0x97   : > { %2204 = vmatmul.msk.f32.gmra.mxu0 %vm488_vm0, %v438_v55 }
  0x98   : > { %2268 = vmatmul.msk.f32.gmra.mxu1 %vm488_vm0, %v372_v56 }
  0x9c   : > { %v701_v58 = vpop.f32.mrf.mxu0 }
  0x9d   : > { %v1102_v59 = vpop.f32.mrf.mxu1 }
  0x9e   : > { %v1103_v63 = vadd.f32 %v1102_v59, %v701_v58  ;;  %v381_v58 = vld [vmem:[%s2582_s26 + $0xc8] sm:$0xff] }
  0x9f   : > { %2205 = vmatmul.msk.f32.gmra.mxu0 %vm488_vm0, %v439_v60 }
  0xa0   : > { %2269 = vmatmul.msk.f32.gmra.mxu1 %vm488_vm0, %v373_v61  ;;  %v1296_v0 = vadd.f32 %v2712_v62, %v1103_v63 }
  0xa2   : > { %v1360_v1 = vmax.f32 %v1296_v0, 0.0 }
  0xa4   : > { %1462 = vmatmul.f32.vlgmr.msra.gmra.mxu2 %v1360_v1  ;;  %v704_v2 = vpop.f32.mrf.mxu0  ;;  %v448_v1 = vld [vmem:[%s2577_s23 + $0xd0] sm:$0xff] }
  0xa5   : > { %v1105_v3 = vpop.f32.mrf.mxu1 }
  0xa6   : > { %v1106_v6 = vadd.f32 %v1105_v3, %v704_v2  ;;  %v382_v2 = vld [vmem:[%s2582_s26 + $0xd0] sm:$0xff] }
  0xa7   : > { %2206 = vmatmul.msk.f32.gmra.mxu0 %vm488_vm0, %v440_v4 }
  0xa8   : > { %2270 = vmatmul.msk.f32.gmra.mxu1 %vm488_vm0, %v374_v5  ;;  %v1297_v7 = vadd.f32 %v2712_v62, %v1106_v6 }
  0xaa   : > { %v1361_v8 = vmax.f32 %v1297_v7, 0.0 }
  0xac   : > { %1465 = vmatmul.f32.gmra.mxu2 %v1361_v8  ;;  %v707_v9 = vpop.f32.mrf.mxu0  ;;  %v449_v8 = vld [vmem:[%s2577_s23 + $0xd8] sm:$0xff] }
  0xad   : > { %v1108_v10 = vpop.f32.mrf.mxu1 }
  0xae   : > { %v1109_v13 = vadd.f32 %v1108_v10, %v707_v9  ;;  %v383_v9 = vld [vmem:[%s2582_s26 + $0xd8] sm:$0xff] }
  0xaf   : > { %2207 = vmatmul.msk.f32.gmra.mxu0 %vm488_vm0, %v441_v11 }
  0xb0   : > { %2271 = vmatmul.msk.f32.gmra.mxu1 %vm488_vm0, %v375_v12  ;;  %v1298_v14 = vadd.f32 %v2712_v62, %v1109_v13  ;;  %v1727_v13 = vld [vmem:[%s3240_s7 + $0x58] sm:$0xff] }
  0xb1   : > { %2340 = vmatpush.msra.mxu3 %v1727_v13  ;;  %1740 = vmatpush.msrb.mxu1 %v1727_v13 }
  0xb2   : > { %v1362_v15 = vmax.f32 %v1298_v14, 0.0 }
  0xb4   : > { %1468 = vmatmul.f32.gmra.mxu2 %v1362_v15  ;;  %v710_v16 = vpop.f32.mrf.mxu0 }
  0xb5   : > { %v1111_v17 = vpop.f32.mrf.mxu1 }
  0xb6   : > { %v1112_v20 = vadd.f32 %v1111_v17, %v710_v16  ;;  %v450_v16 = vld [vmem:[%s2577_s23 + $0xe0] sm:$0xff] }
  0xb7   : > { %2208 = vmatmul.msk.f32.gmra.mxu0 %vm488_vm0, %v442_v18  ;;  %v384_v17 = vld [vmem:[%s2582_s26 + $0xe0] sm:$0xff] }
  0xb8   : > { %2272 = vmatmul.msk.f32.gmra.mxu1 %vm488_vm0, %v376_v19  ;;  %v1299_v21 = vadd.f32 %v2712_v62, %v1112_v20  ;;  %v1726_v19 = vld [vmem:[%s3240_s7 + $0x50] sm:$0xff] }
  0xb9   : > { %2341 = vmatpush.msra.mxu3 %v1726_v19  ;;  %1741 = vmatpush.msrb.mxu1 %v1726_v19  ;;  %v457_v19 = vld [vmem:[%s2577_s23 + $0x118] sm:$0xff] }
  0xba   : > { %v1363_v23 = vmax.f32 %v1299_v21, 0.0  ;;  %v1725_v21 = vld [vmem:[%s3240_s7 + $0x48] sm:$0xff] }
  0xbb   : > { %2342 = vmatpush.msra.mxu3 %v1725_v21  ;;  %1742 = vmatpush.msrb.mxu1 %v1725_v21 }
  0xbc   : > { %1471 = vmatmul.f32.gmra.mxu2 %v1363_v23  ;;  %v713_v24 = vpop.f32.mrf.mxu0 }
  0xbd   : > { %v1114_v25 = vpop.f32.mrf.mxu1  ;;  %2343 = vmatpush.msra.mxu3 %v1724_v22  ;;  %1743 = vmatpush.msrb.mxu1 %v1724_v22 }
  0xbe   : > { %v1115_v28 = vadd.f32 %v1114_v25, %v713_v24  ;;  %v1723_v24 = vld [vmem:[%s3240_s7 + $0x38] sm:$0xff] }
  0xbf   : > { %2209 = vmatmul.msk.f32.gmra.mxu0 %vm488_vm0, %v443_v26  ;;  %2344 = vmatpush.msra.mxu3 %v1723_v24 }
  0xc0   : > { %2273 = vmatmul.msk.f32.gmra.mxu1 %vm488_vm0, %v377_v27  ;;  %v1300_v29 = vadd.f32 %v2712_v62, %v1115_v28  ;;  %v451_v27 = vld [vmem:[%s2577_s23 + $0xe8] sm:$0xff] }
  0xc1   : > { %v385_v28 = vld [vmem:[%s2582_s26 + $0xe8] sm:$0xff]  ;;  %1744 = vmatpush.msrb.mxu1 %v1723_v24 }
  0xc2   : > { %v1364_v30 = vmax.f32 %v1300_v29, 0.0 }
  0xc4   : > { %1474 = vmatmul.f32.gmra.mxu2 %v1364_v30  ;;  %v716_v31 = vpop.f32.mrf.mxu0  ;;  %v1722_v30 = vld [vmem:[%s3240_s7 + $0x30] sm:$0xff] }
  0xc5   : > { %v1117_v32 = vpop.f32.mrf.mxu1  ;;  %2345 = vmatpush.msra.mxu3 %v1722_v30  ;;  %1745 = vmatpush.msrb.mxu1 %v1722_v30  ;;  %v392_v30 = vld [vmem:[%s2582_s26 + $0x120] sm:$0xff] }
  0xc6   : > { %v1118_v35 = vadd.f32 %v1117_v32, %v716_v31  ;;  %v1721_v32 = vld [vmem:[%s3240_s7 + $0x28] sm:$0xff] }
  0xc7   : > { %2210 = vmatmul.msk.f32.gmra.mxu0 %vm488_vm0, %v444_v33  ;;  %v1720_v33 = vld [vmem:[%s3240_s7 + $0x20] sm:$0xff]  ;;  %2346 = vmatpush.msra.mxu3 %v1721_v32 }
  0xc8   : > { %2274 = vmatmul.msk.f32.gmra.mxu1 %vm488_vm0, %v378_v34  ;;  %v1301_v36 = vadd.f32 %v2712_v62, %v1118_v35  ;;  %v1719_v35 = vld [vmem:[%s3240_s7 + $0x18] sm:$0xff] }
  0xc9   : > { %1746 = vmatpush.msrb.mxu1 %v1721_v32  ;;  %2347 = vmatpush.msra.mxu3 %v1720_v33 }
  0xca   : > { %v1365_v37 = vmax.f32 %v1301_v36, 0.0 }
  0xcb   : > { %1747 = vmatpush.msrb.mxu1 %v1720_v33  ;;  %2348 = vmatpush.msra.mxu3 %v1719_v35 }
  0xcc   : > { %1477 = vmatmul.f32.gmra.mxu2 %v1365_v37  ;;  %v719_v38 = vpop.f32.mrf.mxu0 }
  0xcd   : > { %v1120_v39 = vpop.f32.mrf.mxu1  ;;  %1748 = vmatpush.msrb.mxu1 %v1719_v35 }
  0xce   : > { %v1121_v42 = vadd.f32 %v1120_v39, %v719_v38  ;;  %v452_v38 = vld [vmem:[%s2577_s23 + $0xf0] sm:$0xff] }
  0xcf   : > { %2211 = vmatmul.msk.f32.gmra.mxu0 %vm488_vm0, %v445_v40  ;;  %v386_v39 = vld [vmem:[%s2582_s26 + $0xf0] sm:$0xff] }
  0xd0   : > { %2275 = vmatmul.msk.f32.gmra.mxu1 %vm488_vm0, %v379_v41  ;;  %v1302_v43 = vadd.f32 %v2712_v62, %v1121_v42  ;;  %v1718_v41 = vld [vmem:[%s3240_s7 + $0x10] sm:$0xff] }
  0xd1   : > { %2349 = vmatpush.msra.mxu3 %v1718_v41  ;;  %1749 = vmatpush.msrb.mxu1 %v1718_v41 }
  0xd2   : > { %v1366_v44 = vmax.f32 %v1302_v43, 0.0  ;;  %v1717_v43 = vld [vmem:[%s3240_s7 + $0x8] sm:$0xff] }
  0xd3   : > { %2350 = vmatpush.msra.mxu3 %v1717_v43  ;;  %1750 = vmatpush.msrb.mxu1 %v1717_v43 }
  0xd4   : > { %1480 = vmatmul.f32.gmra.mxu2 %v1366_v44  ;;  %v722_v45 = vpop.f32.mrf.mxu0  ;;  %v1716_v44 = vld [vmem:[%s3240_s7] sm:$0xff] }
  0xd5   : > { %v1123_v46 = vpop.f32.mrf.mxu1  ;;  %2351 = vmatpush.msra.mxu3 %v1716_v44  ;;  %1751 = vmatpush.msrb.mxu1 %v1716_v44 }
  0xd6   : > { %v1124_v49 = vadd.f32 %v1123_v46, %v722_v45 }
  0xd7   : > { %2212 = vmatmul.msk.f32.gmra.mxu0 %vm488_vm0, %v446_v47 }
  0xd8   : > { %2276 = vmatmul.msk.f32.gmra.mxu1 %vm488_vm0, %v380_v48  ;;  %v1303_v50 = vadd.f32 %v2712_v62, %v1124_v49  ;;  %v453_v48 = vld [vmem:[%s2577_s23 + $0xf8] sm:$0xff] }
  0xd9   : > { %v387_v49 = vld [vmem:[%s2582_s26 + $0xf8] sm:$0xff] }
  0xda   : > { %v1367_v52 = vmax.f32 %v1303_v50, 0.0 }
  0xdc   : > { %1483 = vmatmul.f32.gmra.mxu2 %v1367_v52  ;;  %v725_v55 = vpop.f32.mrf.mxu0 }
  0xdd   : > { %v1126_v56 = vpop.f32.mrf.mxu1 }
  0xde   : > { %v1127_v59 = vadd.f32 %v1126_v56, %v725_v55 }
  0xdf   : > { %2213 = vmatmul.msk.f32.gmra.mxu0 %vm488_vm0, %v447_v57  ;;  %v454_v57 = vld [vmem:[%s2577_s23 + $0x100] sm:$0xff] }
  0xe0   : > { %2277 = vmatmul.msk.f32.gmra.mxu1 %vm488_vm0, %v381_v58  ;;  %v1304_v60 = vadd.f32 %v2712_v62, %v1127_v59  ;;  %v388_v58 = vld [vmem:[%s2582_s26 + $0x100] sm:$0xff] }
  0xe2   : > { %v1368_v61 = vmax.f32 %v1304_v60, 0.0 }
  0xe4   : > { %1486 = vmatmul.f32.gmra.mxu2 %v1368_v61  ;;  %v728_v63 = vpop.f32.mrf.mxu0 }
  0xe5   : > { %v1129_v0 = vpop.f32.mrf.mxu1 }
  0xe6   : > { %v1130_v3 = vadd.f32 %v1129_v0, %v728_v63 }
  0xe7   : > { %2214 = vmatmul.msk.f32.gmra.mxu0 %vm488_vm0, %v448_v1  ;;  %v455_v1 = vld [vmem:[%s2577_s23 + $0x108] sm:$0xff] }
  0xe8   : > { %2278 = vmatmul.msk.f32.gmra.mxu1 %vm488_vm0, %v382_v2  ;;  %v1305_v4 = vadd.f32 %v2712_v62, %v1130_v3  ;;  %v389_v2 = vld [vmem:[%s2582_s26 + $0x108] sm:$0xff] }
  0xea   : > { %v1369_v5 = vmax.f32 %v1305_v4, 0.0 }
  0xec   : > { %1489 = vmatmul.f32.gmra.mxu2 %v1369_v5  ;;  %v731_v6 = vpop.f32.mrf.mxu0 }
  0xed   : > { %v1132_v7 = vpop.f32.mrf.mxu1 }
  0xee   : > { %v1133_v10 = vadd.f32 %v1132_v7, %v731_v6  ;;  %v2842_v6 = vld [vmem:[%s3239_s6] ss:$0 sm:$0xff] }
  0xef   : > { %2215 = vmatmul.msk.f32.gmra.mxu0 %vm488_vm0, %v449_v8 }
  0xf0   : > { %2279 = vmatmul.msk.f32.gmra.mxu1 %vm488_vm0, %v383_v9  ;;  %v1306_v11 = vadd.f32 %v2712_v62, %v1133_v10  ;;  %v456_v9 = vld [vmem:[%s2577_s23 + $0x110] sm:$0xff] }
  0xf1   : > { %v390_v10 = vld [vmem:[%s2582_s26 + $0x110] sm:$0xff] }
  0xf2   : > { %v1370_v12 = vmax.f32 %v1306_v11, 0.0 }
  0xf4   : > { %1492 = vmatmul.f32.gmra.mxu2 %v1370_v12  ;;  %v734_v14 = vpop.f32.mrf.mxu0 }
  0xf5   : > { %v1135_v15 = vpop.f32.mrf.mxu1 }
  0xf6   : > { %v1136_v18 = vadd.f32 %v1135_v15, %v734_v14 }
  0xf7   : > { %2216 = vmatmul.msk.f32.gmra.mxu0 %vm488_vm0, %v450_v16 }
  0xf8   : > { %2280 = vmatmul.msk.f32.gmra.mxu1 %vm488_vm0, %v384_v17  ;;  %v1307_v20 = vadd.f32 %v2712_v62, %v1136_v18 }
  0xfa   : > { %v1371_v23 = vmax.f32 %v1307_v20, 0.0  ;;  %v391_v20 = vld [vmem:[%s2582_s26 + $0x118] sm:$0xff] }
  0xfc   : > { %1495 = vmatmul.f32.gmra.mxu2 %v1371_v23  ;;  %v737_v25 = vpop.f32.mrf.mxu0 }
  0xfd   : > { %v1138_v26 = vpop.f32.mrf.mxu1 }
  0xfe   : > { %v1139_v29 = vadd.f32 %v1138_v26, %v737_v25 }
  0xff   : > { %2217 = vmatmul.msk.f32.gmra.mxu0 %vm488_vm0, %v451_v27 }
 0x100   : > { %2281 = vmatmul.msk.f32.gmra.mxu1 %vm488_vm0, %v385_v28  ;;  %v1308_v31 = vadd.f32 %v2712_v62, %v1139_v29  ;;  %v458_v29 = vld [vmem:[%s2577_s23 + $0x120] sm:$0xff] }
 0x102   : > { %v1372_v34 = vmax.f32 %v1308_v31, 0.0 }
 0x104   : > { %1498 = vmatmul.f32.gmra.mxu2 %v1372_v34  ;;  %v740_v36 = vpop.f32.mrf.mxu0 }
 0x105   : > { %v1141_v37 = vpop.f32.mrf.mxu1 }
 0x106   : > { %v1142_v40 = vadd.f32 %v1141_v37, %v740_v36 }
 0x107   : > { %2218 = vmatmul.msk.f32.gmra.mxu0 %vm488_vm0, %v452_v38 }
 0x108   : > { %2282 = vmatmul.msk.f32.gmra.mxu1 %vm488_vm0, %v386_v39  ;;  %v1309_v42 = vadd.f32 %v2712_v62, %v1142_v40  ;;  %v459_v39 = vld [vmem:[%s2577_s23 + $0x128] sm:$0xff] }
 0x109   : > { %v393_v40 = vld [vmem:[%s2582_s26 + $0x128] sm:$0xff] }
 0x10a   : > { %v1373_v45 = vmax.f32 %v1309_v42, 0.0 }
 0x10c   : > { %1501 = vmatmul.f32.gmra.mxu2 %v1373_v45  ;;  %v743_v46 = vpop.f32.mrf.mxu0 }
 0x10d   : > { %v1144_v47 = vpop.f32.mrf.mxu1 }
 0x10e   : > { %v1145_v50 = vadd.f32 %v1144_v47, %v743_v46 }
 0x10f   : > { %2219 = vmatmul.msk.f32.gmra.mxu0 %vm488_vm0, %v453_v48 }
 0x110   : > { %2283 = vmatmul.msk.f32.gmra.mxu1 %vm488_vm0, %v387_v49  ;;  %v1310_v51 = vadd.f32 %v2712_v62, %v1145_v50  ;;  %v460_v49 = vld [vmem:[%s2577_s23 + $0x130] sm:$0xff] }
 0x111   : > { %v394_v50 = vld [vmem:[%s2582_s26 + $0x130] sm:$0xff] }
 0x112   : > { %v1374_v52 = vmax.f32 %v1310_v51, 0.0 }
 0x114   : > { %1504 = vmatmul.f32.gmra.mxu2 %v1374_v52  ;;  %v746_v55 = vpop.f32.mrf.mxu0 }
 0x115   : > { %v1147_v56 = vpop.f32.mrf.mxu1 }
 0x116   : > { %v1148_v59 = vadd.f32 %v1147_v56, %v746_v55 }
 0x117   : > { %2220 = vmatmul.msk.f32.gmra.mxu0 %vm488_vm0, %v454_v57 }
 0x118   : > { %2284 = vmatmul.msk.f32.gmra.mxu1 %vm488_vm0, %v388_v58  ;;  %v1311_v60 = vadd.f32 %v2712_v62, %v1148_v59 }
 0x11a   : > { %v1375_v61 = vmax.f32 %v1311_v60, 0.0 }
 0x11c   : > { %1507 = vmatmul.f32.gmra.mxu2 %v1375_v61  ;;  %v749_v63 = vpop.f32.mrf.mxu0  ;;  %v461_v61 = vld [vmem:[%s2577_s23 + $0x138] sm:$0xff] }
 0x11d   : > { %v1150_v0 = vpop.f32.mrf.mxu1 }
 0x11e   : > { %v1151_v3 = vadd.f32 %v1150_v0, %v749_v63  ;;  %v395_v63 = vld [vmem:[%s2582_s26 + $0x138] sm:$0xff] }
 0x11f   : > { %2221 = vmatmul.msk.f32.gmra.mxu0 %vm488_vm0, %v455_v1 }
 0x120   : > { %2285 = vmatmul.msk.f32.gmra.mxu1 %vm488_vm0, %v389_v2  ;;  %v1312_v4 = vadd.f32 %v2712_v62, %v1151_v3 }
 0x122   : > { %v1376_v5 = vmax.f32 %v1312_v4, 0.0 }
 0x124   : > { %1510 = vmatmul.f32.gmra.mxu2 %v1376_v5  ;;  %v752_v7 = vpop.f32.mrf.mxu0 }
 0x125   : > { %v1153_v8 = vpop.f32.mrf.mxu1 }
 0x126   : > { %v1154_v11 = vadd.f32 %v1153_v8, %v752_v7 }
 0x127   : > { %v1463_v12 = vpop.f32.mrf.mxu2  ;;  %2222 = vmatmul.msk.f32.gmra.mxu0 %vm488_vm0, %v456_v9  ;;  %v462_v9 = vld [vmem:[%s2577_s23 + $0x140] sm:$0xff] }
 0x128   : > { %v1464_v13 = vadd.f32 %v2842_v6, %v1463_v12  ;;  %2286 = vmatmul.msk.f32.gmra.mxu1 %vm488_vm0, %v390_v10  ;;  %v1313_v14 = vadd.f32 %v2712_v62, %v1154_v11  ;;  %v396_v10 = vld [vmem:[%s2582_s26 + $0x140] sm:$0xff] }
 0x12a   : > { %v1377_v15 = vmax.f32 %v1313_v14, 0.0  ;;  %v1653_v16 = vmax.f32 %v1464_v13, 0.0 }
 0x12c   : > { %1513 = vmatmul.f32.gmra.mxu2 %v1377_v15  ;;  %1755 = vmatmul.f32.vlgmr.msra.gmra.mxu3 %v1653_v16  ;;  %v755_v17 = vpop.f32.mrf.mxu0 }
 0x12d   : > { %v1156_v18 = vpop.f32.mrf.mxu1 }
 0x12e   : > { %v1157_v21 = vadd.f32 %v1156_v18, %v755_v17 }
 0x12f   : > { %v1466_v22 = vpop.f32.mrf.mxu2  ;;  %2223 = vmatmul.msk.f32.gmra.mxu0 %vm488_vm0, %v457_v19  ;;  %v463_v19 = vld [vmem:[%s2577_s23 + $0x148] sm:$0xff] }
 0x130   : > { %v1467_v23 = vadd.f32 %v2842_v6, %v1466_v22  ;;  %2287 = vmatmul.msk.f32.gmra.mxu1 %vm488_vm0, %v391_v20  ;;  %v1314_v24 = vadd.f32 %v2712_v62, %v1157_v21  ;;  %v397_v20 = vld [vmem:[%s2582_s26 + $0x148] sm:$0xff] }
 0x132   : > { %v1378_v25 = vmax.f32 %v1314_v24, 0.0  ;;  %v1654_v26 = vmax.f32 %v1467_v23, 0.0 }
 0x134   : > { %1516 = vmatmul.f32.gmra.mxu2 %v1378_v25  ;;  %1758 = vmatmul.f32.gmra.mxu3 %v1654_v26  ;;  %v758_v27 = vpop.f32.mrf.mxu0 }
 0x135   : > { %v1159_v28 = vpop.f32.mrf.mxu1 }
 0x136   : > { %v1160_v31 = vadd.f32 %v1159_v28, %v758_v27 }
 0x137   : > { %v1469_v32 = vpop.f32.mrf.mxu2  ;;  %2224 = vmatmul.msk.f32.gmra.mxu0 %vm488_vm0, %v458_v29  ;;  %v464_v29 = vld [vmem:[%s2577_s23 + $0x150] sm:$0xff] }
 0x138   : > { %v1470_v33 = vadd.f32 %v2842_v6, %v1469_v32  ;;  %2288 = vmatmul.msk.f32.gmra.mxu1 %vm488_vm0, %v392_v30  ;;  %v1315_v34 = vadd.f32 %v2712_v62, %v1160_v31  ;;  %v398_v30 = vld [vmem:[%s2582_s26 + $0x150] sm:$0xff] }
 0x13a   : > { %v1379_v35 = vmax.f32 %v1315_v34, 0.0  ;;  %v1655_v36 = vmax.f32 %v1470_v33, 0.0 }
 0x13c   : > { %1519 = vmatmul.f32.gmra.mxu2 %v1379_v35  ;;  %1761 = vmatmul.f32.gmra.mxu3 %v1655_v36  ;;  %v761_v37 = vpop.f32.mrf.mxu0 }
 0x13d   : > { %v1162_v38 = vpop.f32.mrf.mxu1 }
 0x13e   : > { %v1163_v41 = vadd.f32 %v1162_v38, %v761_v37 }
 0x13f   : > { %v1472_v42 = vpop.f32.mrf.mxu2  ;;  %2225 = vmatmul.msk.f32.gmra.mxu0 %vm488_vm0, %v459_v39  ;;  %v465_v39 = vld [vmem:[%s2577_s23 + $0x158] sm:$0xff] }
 0x140   : > { %v1473_v43 = vadd.f32 %v2842_v6, %v1472_v42  ;;  %2289 = vmatmul.msk.f32.gmra.mxu1 %vm488_vm0, %v393_v40  ;;  %v1316_v44 = vadd.f32 %v2712_v62, %v1163_v41  ;;  %v399_v40 = vld [vmem:[%s2582_s26 + $0x158] sm:$0xff] }
 0x142   : > { %v1380_v45 = vmax.f32 %v1316_v44, 0.0  ;;  %v1656_v46 = vmax.f32 %v1473_v43, 0.0 }
 0x144   : > { %1522 = vmatmul.f32.gmra.mxu2 %v1380_v45  ;;  %1764 = vmatmul.f32.gmra.mxu3 %v1656_v46  ;;  %v764_v47 = vpop.f32.mrf.mxu0 }
 0x145   : > { %v1165_v48 = vpop.f32.mrf.mxu1 }
 0x146   : > { %v1166_v51 = vadd.f32 %v1165_v48, %v764_v47 }
 0x147   : > { %v1475_v52 = vpop.f32.mrf.mxu2  ;;  %2226 = vmatmul.msk.f32.gmra.mxu0 %vm488_vm0, %v460_v49  ;;  %v466_v49 = vld [vmem:[%s2577_s23 + $0x160] sm:$0xff] }
 0x148   : > { %v1476_v55 = vadd.f32 %v2842_v6, %v1475_v52  ;;  %2290 = vmatmul.msk.f32.gmra.mxu1 %vm488_vm0, %v394_v50  ;;  %v1317_v56 = vadd.f32 %v2712_v62, %v1166_v51  ;;  %v400_v50 = vld [vmem:[%s2582_s26 + $0x160] sm:$0xff] }
 0x14a   : > { %v1381_v57 = vmax.f32 %v1317_v56, 0.0  ;;  %v1657_v58 = vmax.f32 %v1476_v55, 0.0 }
 0x14c   : > { %1525 = vmatmul.f32.gmra.mxu2 %v1381_v57  ;;  %1767 = vmatmul.f32.gmra.mxu3 %v1657_v58  ;;  %v767_v59 = vpop.f32.mrf.mxu0 }
 0x14d   : > { %v1168_v60 = vpop.f32.mrf.mxu1 }
 0x14e   : > { %v1169_v0 = vadd.f32 %v1168_v60, %v767_v59 }
 0x14f   : > { %v1478_v1 = vpop.f32.mrf.mxu2  ;;  %2227 = vmatmul.msk.f32.gmra.mxu0 %vm488_vm0, %v461_v61  ;;  %v467_v61 = vld [vmem:[%s2577_s23 + $0x168] sm:$0xff] }
 0x150   : > { %v1479_v2 = vadd.f32 %v2842_v6, %v1478_v1  ;;  %2291 = vmatmul.msk.f32.gmra.mxu1 %vm488_vm0, %v395_v63  ;;  %v1318_v3 = vadd.f32 %v2712_v62, %v1169_v0  ;;  %v401_v63 = vld [vmem:[%s2582_s26 + $0x168] sm:$0xff] }
 0x152   : > { %v1382_v4 = vmax.f32 %v1318_v3, 0.0  ;;  %v1658_v5 = vmax.f32 %v1479_v2, 0.0 }
 0x154   : > { %1528 = vmatmul.f32.gmra.mxu2 %v1382_v4  ;;  %1770 = vmatmul.f32.gmra.mxu3 %v1658_v5  ;;  %v770_v7 = vpop.f32.mrf.mxu0 }
 0x155   : > { %v1171_v8 = vpop.f32.mrf.mxu1 }
 0x156   : > { %v1172_v11 = vadd.f32 %v1171_v8, %v770_v7 }
 0x157   : > { %v1481_v12 = vpop.f32.mrf.mxu2  ;;  %2228 = vmatmul.msk.f32.gmra.mxu0 %vm488_vm0, %v462_v9  ;;  %v468_v9 = vld [vmem:[%s2577_s23 + $0x170] sm:$0xff] }
 0x158   : > { %v1482_v13 = vadd.f32 %v2842_v6, %v1481_v12  ;;  %2292 = vmatmul.msk.f32.gmra.mxu1 %vm488_vm0, %v396_v10  ;;  %v1319_v14 = vadd.f32 %v2712_v62, %v1172_v11  ;;  %v402_v10 = vld [vmem:[%s2582_s26 + $0x170] sm:$0xff] }
 0x15a   : > { %v1383_v15 = vmax.f32 %v1319_v14, 0.0  ;;  %v1659_v16 = vmax.f32 %v1482_v13, 0.0 }
 0x15c   : > { %1531 = vmatmul.f32.gmra.mxu2 %v1383_v15  ;;  %1773 = vmatmul.f32.gmra.mxu3 %v1659_v16  ;;  %v773_v17 = vpop.f32.mrf.mxu0 }
 0x15d   : > { %v1174_v18 = vpop.f32.mrf.mxu1 }
 0x15e   : > { %v1175_v21 = vadd.f32 %v1174_v18, %v773_v17 }
 0x15f   : > { %v1484_v22 = vpop.f32.mrf.mxu2  ;;  %2229 = vmatmul.msk.f32.gmra.mxu0 %vm488_vm0, %v463_v19  ;;  %v469_v19 = vld [vmem:[%s2577_s23 + $0x178] sm:$0xff] }
 0x160   : > { %v1320_v23 = vadd.f32 %v2712_v62, %v1175_v21  ;;  %v1485_v24 = vadd.f32 %v2842_v6, %v1484_v22  ;;  %2293 = vmatmul.msk.f32.gmra.mxu1 %vm488_vm0, %v397_v20  ;;  %v403_v20 = vld [vmem:[%s2582_s26 + $0x178] sm:$0xff] }
 0x162   : > { %v1384_v25 = vmax.f32 %v1320_v23, 0.0  ;;  %v1660_v26 = vmax.f32 %v1485_v24, 0.0 }
 0x164   : > { %1534 = vmatmul.f32.gmra.mxu2 %v1384_v25  ;;  %1776 = vmatmul.f32.gmra.mxu3 %v1660_v26  ;;  %v776_v27 = vpop.f32.mrf.mxu0 }
 0x165   : > { %v1177_v28 = vpop.f32.mrf.mxu1 }
 0x166   : > { %v1178_v31 = vadd.f32 %v1177_v28, %v776_v27 }
 0x167   : > { %v1487_v32 = vpop.f32.mrf.mxu2  ;;  %2230 = vmatmul.msk.f32.gmra.mxu0 %vm488_vm0, %v464_v29  ;;  %v470_v29 = vld [vmem:[%s2577_s23 + $0x180] sm:$0xff] }
 0x168   : > { %v1321_v33 = vadd.f32 %v2712_v62, %v1178_v31  ;;  %v1488_v34 = vadd.f32 %v2842_v6, %v1487_v32  ;;  %2294 = vmatmul.msk.f32.gmra.mxu1 %vm488_vm0, %v398_v30  ;;  %v404_v30 = vld [vmem:[%s2582_s26 + $0x180] sm:$0xff] }
 0x16a   : > { %v1385_v35 = vmax.f32 %v1321_v33, 0.0  ;;  %v1661_v36 = vmax.f32 %v1488_v34, 0.0 }
 0x16c   : > { %1537 = vmatmul.f32.gmra.mxu2 %v1385_v35  ;;  %1779 = vmatmul.f32.gmra.mxu3 %v1661_v36  ;;  %v779_v37 = vpop.f32.mrf.mxu0 }
 0x16d   : > { %v1180_v38 = vpop.f32.mrf.mxu1 }
 0x16e   : > { %v1181_v41 = vadd.f32 %v1180_v38, %v779_v37 }
 0x16f   : > { %v1490_v42 = vpop.f32.mrf.mxu2  ;;  %2231 = vmatmul.msk.f32.gmra.mxu0 %vm488_vm0, %v465_v39  ;;  %v471_v39 = vld [vmem:[%s2577_s23 + $0x188] sm:$0xff] }
 0x170   : > { %v1322_v43 = vadd.f32 %v2712_v62, %v1181_v41  ;;  %v1491_v44 = vadd.f32 %v2842_v6, %v1490_v42  ;;  %2295 = vmatmul.msk.f32.gmra.mxu1 %vm488_vm0, %v399_v40  ;;  %v405_v40 = vld [vmem:[%s2582_s26 + $0x188] sm:$0xff] }
 0x172   : > { %v1386_v45 = vmax.f32 %v1322_v43, 0.0  ;;  %v1662_v46 = vmax.f32 %v1491_v44, 0.0 }
 0x174   : > { %1540 = vmatmul.f32.gmra.mxu2 %v1386_v45  ;;  %1782 = vmatmul.f32.gmra.mxu3 %v1662_v46  ;;  %v782_v47 = vpop.f32.mrf.mxu0 }
 0x175   : > { %v1183_v48 = vpop.f32.mrf.mxu1 }
 0x176   : > { %v1184_v51 = vadd.f32 %v1183_v48, %v782_v47 }
 0x177   : > { %v1493_v52 = vpop.f32.mrf.mxu2  ;;  %2232 = vmatmul.msk.f32.gmra.mxu0 %vm488_vm0, %v466_v49  ;;  %v472_v49 = vld [vmem:[%s2577_s23 + $0x190] sm:$0xff] }
 0x178   : > { %v1323_v55 = vadd.f32 %v2712_v62, %v1184_v51  ;;  %v1494_v56 = vadd.f32 %v2842_v6, %v1493_v52  ;;  %2296 = vmatmul.msk.f32.gmra.mxu1 %vm488_vm0, %v400_v50  ;;  %v406_v50 = vld [vmem:[%s2582_s26 + $0x190] sm:$0xff] }
 0x17a   : > { %v1387_v57 = vmax.f32 %v1323_v55, 0.0  ;;  %v1663_v58 = vmax.f32 %v1494_v56, 0.0 }
 0x17c   : > { %1543 = vmatmul.f32.gmra.mxu2 %v1387_v57  ;;  %1785 = vmatmul.f32.gmra.mxu3 %v1663_v58  ;;  %v785_v59 = vpop.f32.mrf.mxu0 }
 0x17d   : > { %v1186_v60 = vpop.f32.mrf.mxu1 }
 0x17e   : > { %v1187_v0 = vadd.f32 %v1186_v60, %v785_v59 }
 0x17f   : > { %v1496_v1 = vpop.f32.mrf.mxu2  ;;  %2233 = vmatmul.msk.f32.gmra.mxu0 %vm488_vm0, %v467_v61  ;;  %v473_v61 = vld [vmem:[%s2577_s23 + $0x198] sm:$0xff] }
 0x180   : > { %v1324_v2 = vadd.f32 %v2712_v62, %v1187_v0  ;;  %v1497_v3 = vadd.f32 %v2842_v6, %v1496_v1  ;;  %2297 = vmatmul.msk.f32.gmra.mxu1 %vm488_vm0, %v401_v63  ;;  %v407_v63 = vld [vmem:[%s2582_s26 + $0x198] sm:$0xff] }
 0x182   : > { %v1388_v4 = vmax.f32 %v1324_v2, 0.0  ;;  %v1664_v5 = vmax.f32 %v1497_v3, 0.0 }
 0x184   : > { %1546 = vmatmul.f32.gmra.mxu2 %v1388_v4  ;;  %1788 = vmatmul.f32.gmra.mxu3 %v1664_v5  ;;  %v788_v7 = vpop.f32.mrf.mxu0 }
 0x185   : > { %v1189_v8 = vpop.f32.mrf.mxu1 }
 0x186   : > { %v1190_v11 = vadd.f32 %v1189_v8, %v788_v7 }
 0x187   : > { %v1499_v12 = vpop.f32.mrf.mxu2  ;;  %2234 = vmatmul.msk.f32.gmra.mxu0 %vm488_vm0, %v468_v9 }
 0x188   : > { %v1325_v13 = vadd.f32 %v2712_v62, %v1190_v11  ;;  %v1500_v14 = vadd.f32 %v2842_v6, %v1499_v12  ;;  %2298 = vmatmul.msk.f32.gmra.mxu1 %vm488_vm0, %v402_v10  ;;  %v474_v10 = vld [vmem:[%s2577_s23 + $0x1a0] sm:$0xff] }
 0x189   : > { %v408_v11 = vld [vmem:[%s2582_s26 + $0x1a0] sm:$0xff] }
 0x18a   : > { %v1389_v15 = vmax.f32 %v1325_v13, 0.0  ;;  %v1665_v16 = vmax.f32 %v1500_v14, 0.0 }
 0x18c   : > { %1549 = vmatmul.f32.gmra.mxu2 %v1389_v15  ;;  %1791 = vmatmul.f32.gmra.mxu3 %v1665_v16  ;;  %v791_v17 = vpop.f32.mrf.mxu0 }
 0x18d   : > { %v1192_v18 = vpop.f32.mrf.mxu1 }
 0x18e   : > { %v1193_v21 = vadd.f32 %v1192_v18, %v791_v17 }
 0x18f   : > { %v1502_v22 = vpop.f32.mrf.mxu2  ;;  %2235 = vmatmul.msk.f32.gmra.mxu0 %vm488_vm0, %v469_v19 }
 0x190   : > { %v1326_v23 = vadd.f32 %v2712_v62, %v1193_v21  ;;  %v1503_v24 = vadd.f32 %v2842_v6, %v1502_v22  ;;  %2299 = vmatmul.msk.f32.gmra.mxu1 %vm488_vm0, %v403_v20  ;;  %v475_v21 = vld [vmem:[%s2577_s23 + $0x1a8] sm:$0xff] }
 0x191   : > { %v409_v22 = vld [vmem:[%s2582_s26 + $0x1a8] sm:$0xff] }
 0x192   : > { %v1390_v25 = vmax.f32 %v1326_v23, 0.0  ;;  %v1666_v26 = vmax.f32 %v1503_v24, 0.0 }
 0x194   : > { %1552 = vmatmul.f32.gmra.mxu2 %v1390_v25  ;;  %1794 = vmatmul.f32.gmra.mxu3 %v1666_v26  ;;  %v794_v27 = vpop.f32.mrf.mxu0 }
 0x195   : > { %v1195_v28 = vpop.f32.mrf.mxu1 }
 0x196   : > { %v1196_v31 = vadd.f32 %v1195_v28, %v794_v27 }
 0x197   : > { %v1505_v32 = vpop.f32.mrf.mxu2  ;;  %2236 = vmatmul.msk.f32.gmra.mxu0 %vm488_vm0, %v470_v29 }
 0x198   : > { %v1327_v33 = vadd.f32 %v2712_v62, %v1196_v31  ;;  %v1506_v34 = vadd.f32 %v2842_v6, %v1505_v32  ;;  %2300 = vmatmul.msk.f32.gmra.mxu1 %vm488_vm0, %v404_v30  ;;  %v476_v32 = vld [vmem:[%s2577_s23 + $0x1b0] sm:$0xff] }
 0x19a   : > { %v1391_v35 = vmax.f32 %v1327_v33, 0.0  ;;  %v1667_v36 = vmax.f32 %v1506_v34, 0.0  ;;  %v410_v33 = vld [vmem:[%s2582_s26 + $0x1b0] sm:$0xff] }
 0x19c   : > { %1555 = vmatmul.f32.gmra.mxu2 %v1391_v35  ;;  %1797 = vmatmul.f32.gmra.mxu3 %v1667_v36  ;;  %v797_v37 = vpop.f32.mrf.mxu0 }
 0x19d   : > { %v1198_v38 = vpop.f32.mrf.mxu1 }
 0x19e   : > { %v1199_v41 = vadd.f32 %v1198_v38, %v797_v37 }
 0x19f   : > { %v1508_v42 = vpop.f32.mrf.mxu2  ;;  %2237 = vmatmul.msk.f32.gmra.mxu0 %vm488_vm0, %v471_v39 }
 0x1a0   : > { %v1328_v43 = vadd.f32 %v2712_v62, %v1199_v41  ;;  %v1509_v44 = vadd.f32 %v2842_v6, %v1508_v42  ;;  %2301 = vmatmul.msk.f32.gmra.mxu1 %vm488_vm0, %v405_v40 }
 0x1a2   : > { %v1392_v45 = vmax.f32 %v1328_v43, 0.0  ;;  %v1668_v46 = vmax.f32 %v1509_v44, 0.0  ;;  %v477_v43 = vld [vmem:[%s2577_s23 + $0x1b8] sm:$0xff] }
 0x1a3   : > { %v411_v44 = vld [vmem:[%s2582_s26 + $0x1b8] sm:$0xff] }
 0x1a4   : > { %1558 = vmatmul.f32.gmra.mxu2 %v1392_v45  ;;  %1800 = vmatmul.f32.gmra.mxu3 %v1668_v46  ;;  %v800_v47 = vpop.f32.mrf.mxu0 }
 0x1a5   : > { %v1201_v48 = vpop.f32.mrf.mxu1 }
 0x1a6   : > { %v1202_v51 = vadd.f32 %v1201_v48, %v800_v47 }
 0x1a7   : > { %v1511_v52 = vpop.f32.mrf.mxu2  ;;  %2238 = vmatmul.msk.f32.gmra.mxu0 %vm488_vm0, %v472_v49 }
 0x1a8   : > { %v1329_v55 = vadd.f32 %v2712_v62, %v1202_v51  ;;  %v1512_v56 = vadd.f32 %v2842_v6, %v1511_v52  ;;  %2302 = vmatmul.msk.f32.gmra.mxu1 %vm488_vm0, %v406_v50 }
 0x1aa   : > { %v1393_v57 = vmax.f32 %v1329_v55, 0.0  ;;  %v1669_v58 = vmax.f32 %v1512_v56, 0.0  ;;  %v478_v56 = vld [vmem:[%s2577_s23 + $0x1c0] sm:$0xff] }
 0x1ac   : > { %1561 = vmatmul.f32.gmra.mxu2 %v1393_v57  ;;  %1803 = vmatmul.f32.gmra.mxu3 %v1669_v58  ;;  %v803_v59 = vpop.f32.mrf.mxu0  ;;  %v412_v57 = vld [vmem:[%s2582_s26 + $0x1c0] sm:$0xff] }
 0x1ad   : > { %v1204_v60 = vpop.f32.mrf.mxu1 }
 0x1ae   : > { %v1205_v0 = vadd.f32 %v1204_v60, %v803_v59 }
 0x1af   : > { %v1514_v1 = vpop.f32.mrf.mxu2  ;;  %v2948_v2 = vpop.f32.mrf.mxu3  ;;  %2239 = vmatmul.msk.f32.gmra.mxu0 %vm488_vm0, %v473_v61 }
 0x1b0   : > { %v1330_v3 = vadd.f32 %v2712_v62, %v1205_v0  ;;  %v1515_v4 = vadd.f32 %v2842_v6, %v1514_v1  ;;  %2303 = vmatmul.msk.f32.gmra.mxu1 %vm488_vm0, %v407_v63 }
 0x1b2   : > { %v1394_v5 = vmax.f32 %v1330_v3, 0.0  ;;  %v1670_v7 = vmax.f32 %v1515_v4, 0.0 }
 0x1b4   : > { %1564 = vmatmul.f32.gmra.mxu2 %v1394_v5  ;;  %1806 = vmatmul.f32.gmra.mxu3 %v1670_v7  ;;  %v806_v8 = vpop.f32.mrf.mxu0  ;;  %v479_v5 = vld [vmem:[%s2577_s23 + $0x1c8] sm:$0xff] }
 0x1b5   : > { %v1207_v9 = vpop.f32.mrf.mxu1  ;;  %v413_v7 = vld [vmem:[%s2582_s26 + $0x1c8] sm:$0xff] }
 0x1b6   : > { %v1208_v12 = vadd.f32 %v1207_v9, %v806_v8 }
 0x1b7   : > { %v1517_v13 = vpop.f32.mrf.mxu2  ;;  %v2956_v14 = vpop.f32.mrf.mxu3  ;;  %2240 = vmatmul.msk.f32.gmra.mxu0 %vm488_vm0, %v474_v10 }
 0x1b8   : > { %v1331_v15 = vadd.f32 %v2712_v62, %v1208_v12  ;;  %v1518_v16 = vadd.f32 %v2842_v6, %v1517_v13  ;;  %2304 = vmatmul.msk.f32.gmra.mxu1 %vm488_vm0, %v408_v11 }
 0x1ba   : > { %v1395_v17 = vmax.f32 %v1331_v15, 0.0  ;;  %v1671_v18 = vmax.f32 %v1518_v16, 0.0 }
 0x1bc   : > { %1567 = vmatmul.f32.gmra.mxu2 %v1395_v17  ;;  %1809 = vmatmul.f32.gmra.mxu3 %v1671_v18  ;;  %v809_v19 = vpop.f32.mrf.mxu0  ;;  %v480_v18 = vld [vmem:[%s2577_s23 + $0x1d0] sm:$0xff] }
 0x1bd   : > { %v1210_v20 = vpop.f32.mrf.mxu1 }
 0x1be   : > { %v1211_v23 = vadd.f32 %v1210_v20, %v809_v19  ;;  %v414_v19 = vld [vmem:[%s2582_s26 + $0x1d0] sm:$0xff] }
 0x1bf   : > { %v1520_v24 = vpop.f32.mrf.mxu2  ;;  %v2964_v25 = vpop.f32.mrf.mxu3  ;;  %2241 = vmatmul.msk.f32.gmra.mxu0 %vm488_vm0, %v475_v21 }
 0x1c0   : > { %v1332_v26 = vadd.f32 %v2712_v62, %v1211_v23  ;;  %v1521_v27 = vadd.f32 %v2842_v6, %v1520_v24  ;;  %2305 = vmatmul.msk.f32.gmra.mxu1 %vm488_vm0, %v409_v22 }
 0x1c2   : > { %v1396_v28 = vmax.f32 %v1332_v26, 0.0  ;;  %v1672_v29 = vmax.f32 %v1521_v27, 0.0 }
 0x1c4   : > { %1570 = vmatmul.f32.gmra.mxu2 %v1396_v28  ;;  %1812 = vmatmul.f32.gmra.mxu3 %v1672_v29  ;;  %v812_v30 = vpop.f32.mrf.mxu0 }
 0x1c5   : > { %v1213_v31 = vpop.f32.mrf.mxu1 }
 0x1c6   : > { %v1214_v34 = vadd.f32 %v1213_v31, %v812_v30  ;;  %v481_v30 = vld [vmem:[%s2577_s23 + $0x1d8] sm:$0xff] }
 0x1c7   : > { %v1523_v35 = vpop.f32.mrf.mxu2  ;;  %v2972_v36 = vpop.f32.mrf.mxu3  ;;  %2242 = vmatmul.msk.f32.gmra.mxu0 %vm488_vm0, %v476_v32  ;;  %v415_v31 = vld [vmem:[%s2582_s26 + $0x1d8] sm:$0xff] }
 0x1c8   : > { %v1333_v37 = vadd.f32 %v2712_v62, %v1214_v34  ;;  %v1524_v38 = vadd.f32 %v2842_v6, %v1523_v35  ;;  %2306 = vmatmul.msk.f32.gmra.mxu1 %vm488_vm0, %v410_v33  ;;  %v2985_v62 = vld [vmem:[%s3237_s4] ss:$0 sm:$0xff] }
 0x1ca   : > { %v1397_v39 = vmax.f32 %v1333_v37, 0.0  ;;  %v1673_v40 = vmax.f32 %v1524_v38, 0.0 }
 0x1cc   : > { %1573 = vmatmul.f32.gmra.mxu2 %v1397_v39  ;;  %1815 = vmatmul.f32.gmra.mxu3 %v1673_v40  ;;  %v815_v41 = vpop.f32.mrf.mxu0 }
 0x1cd   : > { %v1216_v42 = vpop.f32.mrf.mxu1 }
 0x1ce   : > { %v1217_v45 = vadd.f32 %v1216_v42, %v815_v41  ;;  %v482_v42 = vld [vmem:[%s2577_s23 + $0x1e0] sm:$0xff] }
 0x1cf   : > { %v1526_v46 = vpop.f32.mrf.mxu2  ;;  %v2980_v47 = vpop.f32.mrf.mxu3  ;;  %2243 = vmatmul.msk.f32.gmra.mxu0 %vm488_vm0, %v477_v43  ;;  %v416_v43 = vld [vmem:[%s2582_s26 + $0x1e0] sm:$0xff] }
 0x1d0   : > { %v1334_v48 = vadd.f32 %v2985_v62, %v1217_v45  ;;  %v1527_v49 = vadd.f32 %v2842_v6, %v1526_v46  ;;  %2307 = vmatmul.msk.f32.gmra.mxu1 %vm488_vm0, %v411_v44 }
 0x1d2   : > { %v1398_v50 = vmax.f32 %v1334_v48, 0.0  ;;  %v1674_v51 = vmax.f32 %v1527_v49, 0.0 }
 0x1d4   : > { %1576 = vmatmul.f32.gmra.mxu2 %v1398_v50  ;;  %1818 = vmatmul.f32.gmra.mxu3 %v1674_v51  ;;  %v818_v52 = vpop.f32.mrf.mxu0 }
 0x1d5   : > { %v1219_v55 = vpop.f32.mrf.mxu1 }
 0x1d6   : > { %v1220_v58 = vadd.f32 %v1219_v55, %v818_v52 }
 0x1d7   : > { %v1529_v59 = vpop.f32.mrf.mxu2  ;;  %v2993_v60 = vpop.f32.mrf.mxu3  ;;  %2244 = vmatmul.msk.f32.gmra.mxu0 %vm488_vm0, %v478_v56  ;;  %v483_v56 = vld [vmem:[%s2577_s23 + $0x1e8] sm:$0xff] }
 0x1d8   : > { %v1335_v61 = vadd.f32 %v2985_v62, %v1220_v58  ;;  %v1530_v63 = vadd.f32 %v2842_v6, %v1529_v59  ;;  %2308 = vmatmul.msk.f32.gmra.mxu1 %vm488_vm0, %v412_v57  ;;  %v417_v57 = vld [vmem:[%s2582_s26 + $0x1e8] sm:$0xff] }
 0x1da   : > { %v1399_v0 = vmax.f32 %v1335_v61, 0.0  ;;  %v1675_v1 = vmax.f32 %v1530_v63, 0.0 }
 0x1dc   : > { %1579 = vmatmul.f32.gmra.mxu2 %v1399_v0  ;;  %1821 = vmatmul.f32.gmra.mxu3 %v1675_v1  ;;  %v821_v3 = vpop.f32.mrf.mxu0 }
 0x1dd   : > { %v1222_v4 = vpop.f32.mrf.mxu1 }
 0x1de   : > { %v1223_v8 = vadd.f32 %v1222_v4, %v821_v3 }
 0x1df   : > { %v1532_v9 = vpop.f32.mrf.mxu2  ;;  %v3001_v10 = vpop.f32.mrf.mxu3  ;;  %2245 = vmatmul.msk.f32.gmra.mxu0 %vm488_vm0, %v479_v5 }
 0x1e0   : > { %v1336_v11 = vadd.f32 %v2985_v62, %v1223_v8  ;;  %v1533_v12 = vadd.f32 %v2842_v6, %v1532_v9  ;;  %2309 = vmatmul.msk.f32.gmra.mxu1 %vm488_vm0, %v413_v7  ;;  %v484_v7 = vld [vmem:[%s2577_s23 + $0x1f0] sm:$0xff] }
 0x1e1   : > { %v418_v8 = vld [vmem:[%s2582_s26 + $0x1f0] sm:$0xff] }
 0x1e2   : > { %v1400_v13 = vmax.f32 %v1336_v11, 0.0  ;;  %v1676_v15 = vmax.f32 %v1533_v12, 0.0 }
 0x1e4   : > { %1582 = vmatmul.f32.gmra.mxu2 %v1400_v13  ;;  %1824 = vmatmul.f32.gmra.mxu3 %v1676_v15  ;;  %v824_v16 = vpop.f32.mrf.mxu0 }
 0x1e5   : > { %v1225_v17 = vpop.f32.mrf.mxu1 }
 0x1e6   : > { %v1226_v20 = vadd.f32 %v1225_v17, %v824_v16 }
 0x1e7   : > { %v1535_v21 = vpop.f32.mrf.mxu2  ;;  %v3009_v22 = vpop.f32.mrf.mxu3  ;;  %2246 = vmatmul.msk.f32.gmra.mxu0 %vm488_vm0, %v480_v18 }
 0x1e8   : > { %v1337_v23 = vadd.f32 %v2985_v62, %v1226_v20  ;;  %v1536_v24 = vadd.f32 %v2842_v6, %v1535_v21  ;;  %2310 = vmatmul.msk.f32.gmra.mxu1 %vm488_vm0, %v414_v19  ;;  %v485_v20 = vld [vmem:[%s2577_s23 + $0x1f8] sm:$0xff]  ;;  %s2107_s23 = sshll.u32 %s2103_s17, 4  ;;  %s2108_s23 = int_to_ptr.hbm [resolvable:$true] %s2107_s23 }
 0x1e9   : > { %v419_v21 = vld [vmem:[%s2582_s26 + $0x1f8] sm:$0xff]  ;;  %s2410_s26 = sshra.s32 %s2108_s23, 4  ;;  %s2411_s26 = int_to_ptr.hbm [resolvable:$true] %s2410_s26 }
 0x1ea   : > { %v1401_v26 = vmax.f32 %v1337_v23, 0.0  ;;  %v1677_v27 = vmax.f32 %v1536_v24, 0.0  ;;  %v1100_v23 = vadd.f32 %v2698_v54, %v2696_v53  ;;  %s2412_s24 = scalar_lea.hbm %s2411_s26, 4  ;;  %p2417_p0 = scmp.lt.s32.totalorder %s2411_s26, %s3242_s9 }
 0x1eb   : > { %p2413_p11 = scmp.ne.s32.totalorder %s2411_s26, %s2412_s24  ;;  %p2418_p1 = scmp.lt.s32.totalorder %s2416_s29, %s2412_s24 }
 0x1ec   : > { %1585 = vmatmul.f32.gmra.mxu2 %v1401_v26  ;;  %1827 = vmatmul.f32.gmra.mxu3 %v1677_v27  ;;  %v827_v28 = vpop.f32.mrf.mxu0 }
 0x1ed   : > { %v1228_v29 = vpop.f32.mrf.mxu1  ;;  %p2414_p12 = pnand %p2413_p11, %p2548_p5  ;;  %p2419_p2 = por %p2418_p1, %p2417_p0 }
 0x1ee   : > { %v1229_v32 = vadd.f32 %v1228_v29, %v827_v28 }
 0x1ef   : > { %v1538_v33 = vpop.f32.mrf.mxu2  ;;  %v3017_v34 = vpop.f32.mrf.mxu3  ;;  %2247 = vmatmul.msk.f32.gmra.mxu0 %vm488_vm0, %v481_v30  ;;  %v1295_v30 = vadd.f32 %v2985_v62, %v1100_v23  ;;  %p2415_p13 = pneg %p2414_p12 }
 0x1f0   : > { %v1338_v35 = vadd.f32 %v2985_v62, %v1229_v32  ;;  %v1539_v37 = vadd.f32 %v2842_v6, %v1538_v33  ;;  %2311 = vmatmul.msk.f32.gmra.mxu1 %vm488_vm0, %v415_v31 }
 0x1f1   : > { %v1359_v54 = vmax.f32 %v1295_v30, 0.0  ;;  %p2420_p3 = pnand %p2419_p2, %p2415_p13 }
 0x1f2   : > { %v1402_v38 = vmax.f32 %v1338_v35, 0.0  ;;  %v1678_v39 = vmax.f32 %v1539_v37, 0.0 }
 0x1f4   : > { %1588 = vmatmul.f32.gmra.mxu2 %v1402_v38  ;;  %1830 = vmatmul.f32.gmra.mxu3 %v1678_v39  ;;  %v830_v40 = vpop.f32.mrf.mxu0 }
 0x1f5   : > { %v1231_v41 = vpop.f32.mrf.mxu1 }
 0x1f6   : > { %v1232_v44 = vadd.f32 %v1231_v41, %v830_v40 }
 0x1f7   : > { %v1541_v45 = vpop.f32.mrf.mxu2  ;;  %v3025_v46 = vpop.f32.mrf.mxu3  ;;  %2248 = vmatmul.msk.f32.gmra.mxu0 %vm488_vm0, %v482_v42 }
 0x1f8   : > { %v1339_v48 = vadd.f32 %v2985_v62, %v1232_v44  ;;  %v1542_v49 = vadd.f32 %v2842_v6, %v1541_v45  ;;  %2312 = vmatmul.msk.f32.gmra.mxu1 %vm488_vm0, %v416_v43 }
 0x1fa   : > { %v1403_v50 = vmax.f32 %v1339_v48, 0.0  ;;  %v1679_v51 = vmax.f32 %v1542_v49, 0.0 }
 0x1fc   : > { %1591 = vmatmul.f32.gmra.mxu2 %v1403_v50  ;;  %1833 = vmatmul.f32.gmra.mxu3 %v1679_v51  ;;  %v833_v52 = vpop.f32.mrf.mxu0 }
 0x1fd   : > { %v1234_v55 = vpop.f32.mrf.mxu1 }
 0x1fe   : > { %v1235_v58 = vadd.f32 %v1234_v55, %v833_v52 }
 0x1ff   : > { %v1544_v59 = vpop.f32.mrf.mxu2  ;;  %v3033_v61 = vpop.f32.mrf.mxu3  ;;  %2249 = vmatmul.msk.f32.gmra.mxu0 %vm488_vm0, %v483_v56 }
 0x200   : > { %v1340_v63 = vadd.f32 %v2985_v62, %v1235_v58  ;;  %v1545_v0 = vadd.f32 %v2842_v6, %v1544_v59  ;;  %2313 = vmatmul.msk.f32.gmra.mxu1 %vm488_vm0, %v417_v57  ;;  %v3069_v59 = vld [vmem:[%s3241_s8] ss:$0 sm:$0xff] }
 0x202   : > { %v1404_v1 = vmax.f32 %v1340_v63, 0.0  ;;  %v1680_v3 = vmax.f32 %v1545_v0, 0.0 }
 0x204   : > { %1594 = vmatmul.f32.gmra.mxu2 %v1404_v1  ;;  %1836 = vmatmul.f32.gmra.mxu3 %v1680_v3  ;;  %v836_v4 = vpop.f32.mrf.mxu0 }
 0x205   : > { %v1237_v5 = vpop.f32.mrf.mxu1 }
 0x206   : > { %v1238_v9 = vadd.f32 %v1237_v5, %v836_v4 }
 0x207   : > { %v1547_v11 = vpop.f32.mrf.mxu2  ;;  %v3041_v12 = vpop.f32.mrf.mxu3  ;;  %2250 = vmatmul.msk.f32.gmra.mxu0 %vm488_vm0, %v484_v7 }
 0x208   : > { %v1341_v13 = vadd.f32 %v2985_v62, %v1238_v9  ;;  %v1548_v15 = vadd.f32 %v2842_v6, %v1547_v11  ;;  %2314 = vmatmul.msk.f32.gmra.mxu1 %vm488_vm0, %v418_v8 }
 0x20a   : > { %v1405_v16 = vmax.f32 %v1341_v13, 0.0  ;;  %v1681_v17 = vmax.f32 %v1548_v15, 0.0 }
 0x20c   : > { %1597 = vmatmul.f32.gmra.mxu2 %v1405_v16  ;;  %1839 = vmatmul.f32.gmra.mxu3 %v1681_v17  ;;  %v839_v18 = vpop.f32.mrf.mxu0 }
 0x20d   : > { %v1240_v19 = vpop.f32.mrf.mxu1 }
 0x20e   : > { %v1241_v24 = vadd.f32 %v1240_v19, %v839_v18 }
 0x20f   : > { %v1550_v26 = vpop.f32.mrf.mxu2  ;;  %v3051_v27 = vpop.f32.mrf.mxu3  ;;  %2251 = vmatmul.msk.f32.gmra.mxu0 %vm488_vm0, %v485_v20 }
 0x210   : > { %v1342_v28 = vadd.f32 %v2985_v62, %v1241_v24  ;;  %v1551_v29 = vadd.f32 %v2842_v6, %v1550_v26  ;;  %2315 = vmatmul.msk.f32.gmra.mxu1 %vm488_vm0, %v419_v21 }
 0x212   : > { %v1406_v31 = vmax.f32 %v1342_v28, 0.0  ;;  %v1682_v32 = vmax.f32 %v1551_v29, 0.0 }
 0x214   : > { %1600 = vmatmul.f32.gmra.mxu2 %v1406_v31  ;;  %1842 = vmatmul.f32.gmra.mxu3 %v1682_v32  ;;  %v842_v33 = vpop.f32.mrf.mxu0 }
 0x215   : > { %v1243_v53 = vpop.f32.mrf.mxu1 }
 0x216   : > { %v1244_v35 = vadd.f32 %v1243_v53, %v842_v33 }
 0x217   : > { %v1553_v37 = vpop.f32.mrf.mxu2  ;;  %v3058_v38 = vpop.f32.mrf.mxu3  ;;  %1459 = vmatmul.f32.vlgmr.msrb.gmra.mxu0 %v1359_v54 }
 0x218   : > { %v1343_v39 = vadd.f32 %v2985_v62, %v1244_v35  ;;  %v1554_v40 = vadd.f32 %v2842_v6, %v1553_v37 }
 0x21a   : > { %v1407_v41 = vmax.f32 %v1343_v39, 0.0  ;;  %v1683_v42 = vmax.f32 %v1554_v40, 0.0 }
 0x21c   : > { %1603 = vmatmul.f32.gmra.mxu2 %v1407_v41  ;;  %1845 = vmatmul.f32.gmra.mxu3 %v1683_v42  ;;  %v845_v43 = vpop.f32.mrf.mxu0 }
 0x21d   : > { %v1246_v44 = vpop.f32.mrf.mxu1 }
 0x21e   : > { %v1247_v45 = vadd.f32 %v1246_v44, %v845_v43 }
 0x21f   : > { %v1556_v48 = vpop.f32.mrf.mxu2  ;;  %v3062_v49 = vpop.f32.mrf.mxu3 }
 0x220   : > { %v1344_v50 = vadd.f32 %v2985_v62, %v1247_v45  ;;  %v1557_v51 = vadd.f32 %v2842_v6, %v1556_v48 }
 0x222   : > { %v1408_v52 = vmax.f32 %v1344_v50, 0.0  ;;  %v1684_v55 = vmax.f32 %v1557_v51, 0.0 }
 0x224   : > { %1606 = vmatmul.f32.gmra.mxu2 %v1408_v52  ;;  %1848 = vmatmul.f32.gmra.mxu3 %v1684_v55  ;;  %v848_v56 = vpop.f32.mrf.mxu0 }
 0x225   : > { %v1249_v57 = vpop.f32.mrf.mxu1 }
 0x226   : > { %v1250_v58 = vadd.f32 %v1249_v57, %v848_v56  ;;  %v3087_v56 = vld [vmem:[%s3239_s6] ss:$0 sm:$0xff] }
 0x227   : > { %v1559_v63 = vpop.f32.mrf.mxu2  ;;  %v1801_v0 = vpop.f32.mrf.mxu3 }
 0x228   : > { %v1345_v1 = vadd.f32 %v2985_v62, %v1250_v58  ;;  %v1560_v3 = vadd.f32 %v2842_v6, %v1559_v63  ;;  %v1802_v4 = vadd.f32 %v3069_v59, %v1801_v0 }
 0x22a   : > { %v1409_v5 = vmax.f32 %v1345_v1, 0.0  ;;  %v1685_v7 = vmax.f32 %v1560_v3, 0.0  ;;  %1977 = vxpose.xlu1.b32.start [1/16] (narrow) %v1802_v4, 8 }
 0x22c   : > { %1609 = vmatmul.f32.gmra.mxu2 %v1409_v5  ;;  %1851 = vmatmul.f32.gmra.mxu3 %v1685_v7  ;;  %v851_v8 = vpop.f32.mrf.mxu0 }
 0x22d   : > { %v1252_v9 = vpop.f32.mrf.mxu1 }
 0x22e   : > { %v1253_v11 = vadd.f32 %v1252_v9, %v851_v8 }
 0x22f   : > { %v1562_v13 = vpop.f32.mrf.mxu2  ;;  %v1804_v15 = vpop.f32.mrf.mxu3 }
 0x230   : > { %v1346_v16 = vadd.f32 %v2985_v62, %v1253_v11  ;;  %v1563_v17 = vadd.f32 %v2842_v6, %v1562_v13  ;;  %v1805_v18 = vadd.f32 %v3069_v59, %v1804_v15 }
 0x232   : > { %v1410_v19 = vmax.f32 %v1346_v16, 0.0  ;;  %v1686_v20 = vmax.f32 %v1563_v17, 0.0  ;;  %1978 = vxpose.xlu1.b32.cont [2/16] (narrow) %v1805_v18, 8 }
 0x234   : > { %1612 = vmatmul.f32.gmra.mxu2 %v1410_v19  ;;  %1854 = vmatmul.f32.gmra.mxu3 %v1686_v20  ;;  %v854_v21 = vpop.f32.mrf.mxu0 }
 0x235   : > { %v1255_v23 = vpop.f32.mrf.mxu1 }
 0x236   : > { %v1256_v24 = vadd.f32 %v1255_v23, %v854_v21 }
 0x237   : > { %v1565_v26 = vpop.f32.mrf.mxu2  ;;  %v1807_v28 = vpop.f32.mrf.mxu3 }
 0x238   : > { %v1347_v29 = vadd.f32 %v2985_v62, %v1256_v24  ;;  %v1566_v30 = vadd.f32 %v2842_v6, %v1565_v26  ;;  %v1808_v31 = vadd.f32 %v3069_v59, %v1807_v28 }
 0x23a   : > { %v1411_v32 = vmax.f32 %v1347_v29, 0.0  ;;  %v1687_v33 = vmax.f32 %v1566_v30, 0.0  ;;  %1979 = vxpose.xlu1.b32.cont [3/16] (narrow) %v1808_v31, 8 }
 0x23c   : > { %1615 = vmatmul.f32.gmra.mxu2 %v1411_v32  ;;  %1857 = vmatmul.f32.gmra.mxu3 %v1687_v33  ;;  %v857_v53 = vpop.f32.mrf.mxu0 }
 0x23d   : > { %v1258_v54 = vpop.f32.mrf.mxu1 }
 0x23e   : > { %v1259_v35 = vadd.f32 %v1258_v54, %v857_v53 }
 0x23f   : > { %v1568_v37 = vpop.f32.mrf.mxu2  ;;  %v1810_v39 = vpop.f32.mrf.mxu3 }
 0x240   : > { %v1348_v40 = vadd.f32 %v2985_v62, %v1259_v35  ;;  %v1569_v41 = vadd.f32 %v2842_v6, %v1568_v37  ;;  %v1811_v42 = vadd.f32 %v3069_v59, %v1810_v39 }
 0x242   : > { %v1412_v43 = vmax.f32 %v1348_v40, 0.0  ;;  %v1688_v44 = vmax.f32 %v1569_v41, 0.0  ;;  %1980 = vxpose.xlu1.b32.cont [4/16] (narrow) %v1811_v42, 8 }
 0x244   : > { %1618 = vmatmul.f32.gmra.mxu2 %v1412_v43  ;;  %1860 = vmatmul.f32.gmra.mxu3 %v1688_v44  ;;  %v860_v45 = vpop.f32.mrf.mxu0 }
 0x245   : > { %v1261_v48 = vpop.f32.mrf.mxu1 }
 0x246   : > { %v1262_v50 = vadd.f32 %v1261_v48, %v860_v45 }
 0x247   : > { %v1571_v51 = vpop.f32.mrf.mxu2  ;;  %v1813_v52 = vpop.f32.mrf.mxu3 }
 0x248   : > { %v1349_v55 = vadd.f32 %v2985_v62, %v1262_v50  ;;  %v1572_v6 = vadd.f32 %v3087_v56, %v1571_v51  ;;  %v1814_v57 = vadd.f32 %v3069_v59, %v1813_v52 }
 0x24a   : > { %v1413_v58 = vmax.f32 %v1349_v55, 0.0  ;;  %v1689_v63 = vmax.f32 %v1572_v6, 0.0  ;;  %1981 = vxpose.xlu1.b32.cont [5/16] (narrow) %v1814_v57, 8 }
 0x24c   : > { %1621 = vmatmul.f32.gmra.mxu2 %v1413_v58  ;;  %1863 = vmatmul.f32.gmra.mxu3 %v1689_v63  ;;  %v863_v0 = vpop.f32.mrf.mxu0 }
 0x24d   : > { %v1264_v1 = vpop.f32.mrf.mxu1 }
 0x24e   : > { %v1265_v3 = vadd.f32 %v1264_v1, %v863_v0 }
 0x24f   : > { %v1574_v4 = vpop.f32.mrf.mxu2  ;;  %v1816_v5 = vpop.f32.mrf.mxu3 }
 0x250   : > { %v1350_v7 = vadd.f32 %v2985_v62, %v1265_v3  ;;  %v1575_v8 = vadd.f32 %v3087_v56, %v1574_v4  ;;  %v1817_v9 = vadd.f32 %v3069_v59, %v1816_v5 }
 0x252   : > { %v1414_v11 = vmax.f32 %v1350_v7, 0.0  ;;  %v1690_v13 = vmax.f32 %v1575_v8, 0.0  ;;  %1982 = vxpose.xlu1.b32.cont [6/16] (narrow) %v1817_v9, 8 }
 0x254   : > { %1624 = vmatmul.f32.gmra.mxu2 %v1414_v11  ;;  %1866 = vmatmul.f32.gmra.mxu3 %v1690_v13  ;;  %v866_v15 = vpop.f32.mrf.mxu0 }
 0x255   : > { %v1267_v16 = vpop.f32.mrf.mxu1 }
 0x256   : > { %v1268_v17 = vadd.f32 %v1267_v16, %v866_v15 }
 0x257   : > { %v1577_v18 = vpop.f32.mrf.mxu2  ;;  %v1819_v19 = vpop.f32.mrf.mxu3 }
 0x258   : > { %v1351_v20 = vadd.f32 %v2985_v62, %v1268_v17  ;;  %v1578_v21 = vadd.f32 %v3087_v56, %v1577_v18  ;;  %v1820_v23 = vadd.f32 %v3069_v59, %v1819_v19 }
 0x25a   : > { %v1415_v24 = vmax.f32 %v1351_v20, 0.0  ;;  %v1691_v26 = vmax.f32 %v1578_v21, 0.0  ;;  %1983 = vxpose.xlu1.b32.cont [7/16] (narrow) %v1820_v23, 8 }
 0x25c   : > { %1627 = vmatmul.f32.gmra.mxu2 %v1415_v24  ;;  %1869 = vmatmul.f32.gmra.mxu3 %v1691_v26  ;;  %v869_v28 = vpop.f32.mrf.mxu0 }
 0x25d   : > { %v1270_v29 = vpop.f32.mrf.mxu1 }
 0x25e   : > { %v1271_v30 = vadd.f32 %v1270_v29, %v869_v28 }
 0x25f   : > { %v1580_v31 = vpop.f32.mrf.mxu2  ;;  %v1822_v32 = vpop.f32.mrf.mxu3 }
 0x260   : > { %v1352_v33 = vadd.f32 %v2985_v62, %v1271_v30  ;;  %v1581_v53 = vadd.f32 %v3087_v56, %v1580_v31  ;;  %v1823_v54 = vadd.f32 %v3069_v59, %v1822_v32 }
 0x262   : > { %v1416_v35 = vmax.f32 %v1352_v33, 0.0  ;;  %v1692_v37 = vmax.f32 %v1581_v53, 0.0  ;;  %1984 = vxpose.xlu1.b32.cont [8/16] (narrow) %v1823_v54, 8 }
 0x264   : > { %1630 = vmatmul.f32.gmra.mxu2 %v1416_v35  ;;  %1872 = vmatmul.f32.gmra.mxu3 %v1692_v37  ;;  %v872_v39 = vpop.f32.mrf.mxu0 }
 0x265   : > { %v1273_v40 = vpop.f32.mrf.mxu1 }
 0x266   : > { %v1274_v41 = vadd.f32 %v1273_v40, %v872_v39 }
 0x267   : > { %v1583_v42 = vpop.f32.mrf.mxu2  ;;  %v1825_v43 = vpop.f32.mrf.mxu3 }
 0x268   : > { %v1353_v44 = vadd.f32 %v2985_v62, %v1274_v41  ;;  %v1584_v45 = vadd.f32 %v3087_v56, %v1583_v42  ;;  %v1826_v48 = vadd.f32 %v3069_v59, %v1825_v43 }
 0x26a   : > { %v1417_v50 = vmax.f32 %v1353_v44, 0.0  ;;  %v1693_v51 = vmax.f32 %v1584_v45, 0.0  ;;  %1985 = vxpose.xlu1.b32.cont [9/16] (narrow) %v1826_v48, 8 }
 0x26c   : > { %1633 = vmatmul.f32.gmra.mxu2 %v1417_v50  ;;  %1875 = vmatmul.f32.gmra.mxu3 %v1693_v51  ;;  %v875_v52 = vpop.f32.mrf.mxu0 }
 0x26d   : > { %v1276_v55 = vpop.f32.mrf.mxu1 }
 0x26e   : > { %v1277_v6 = vadd.f32 %v1276_v55, %v875_v52 }
 0x26f   : > { %v1586_v57 = vpop.f32.mrf.mxu2  ;;  %v1828_v58 = vpop.f32.mrf.mxu3 }
 0x270   : > { %v1354_v63 = vadd.f32 %v2985_v62, %v1277_v6  ;;  %v1587_v0 = vadd.f32 %v3087_v56, %v1586_v57  ;;  %v1829_v1 = vadd.f32 %v3069_v59, %v1828_v58 }
 0x272   : > { %v1418_v3 = vmax.f32 %v1354_v63, 0.0  ;;  %v1694_v4 = vmax.f32 %v1587_v0, 0.0  ;;  %1986 = vxpose.xlu1.b32.cont [10/16] (narrow) %v1829_v1, 8 }
 0x274   : > { %1636 = vmatmul.f32.gmra.mxu2 %v1418_v3  ;;  %1878 = vmatmul.f32.gmra.mxu3 %v1694_v4  ;;  %v878_v5 = vpop.f32.mrf.mxu0 }
 0x275   : > { %v1279_v7 = vpop.f32.mrf.mxu1 }
 0x276   : > { %v1280_v8 = vadd.f32 %v1279_v7, %v878_v5 }
 0x277   : > { %v1589_v9 = vpop.f32.mrf.mxu2  ;;  %v1831_v11 = vpop.f32.mrf.mxu3 }
 0x278   : > { %v1355_v13 = vadd.f32 %v2985_v62, %v1280_v8  ;;  %v1590_v15 = vadd.f32 %v3087_v56, %v1589_v9  ;;  %v1832_v16 = vadd.f32 %v3069_v59, %v1831_v11 }
 0x27a   : > { %v1419_v17 = vmax.f32 %v1355_v13, 0.0  ;;  %v1695_v18 = vmax.f32 %v1590_v15, 0.0  ;;  %1987 = vxpose.xlu1.b32.cont [11/16] (narrow) %v1832_v16, 8 }
 0x27c   : > { %1639 = vmatmul.f32.gmra.mxu2 %v1419_v17  ;;  %1881 = vmatmul.f32.gmra.mxu3 %v1695_v18  ;;  %v881_v19 = vpop.f32.mrf.mxu0 }
 0x27d   : > { %v1282_v20 = vpop.f32.mrf.mxu1 }
 0x27e   : > { %v1283_v21 = vadd.f32 %v1282_v20, %v881_v19 }
 0x27f   : > { %v1592_v23 = vpop.f32.mrf.mxu2  ;;  %v1834_v24 = vpop.f32.mrf.mxu3 }
 0x280   : > { %v1356_v26 = vadd.f32 %v2985_v62, %v1283_v21  ;;  %v1593_v28 = vadd.f32 %v3087_v56, %v1592_v23  ;;  %v1835_v29 = vadd.f32 %v3069_v59, %v1834_v24 }
 0x282   : > { %v1420_v30 = vmax.f32 %v1356_v26, 0.0  ;;  %v1696_v31 = vmax.f32 %v1593_v28, 0.0  ;;  %1988 = vxpose.xlu1.b32.cont [12/16] (narrow) %v1835_v29, 8 }
 0x284   : > { %1642 = vmatmul.f32.gmra.mxu2 %v1420_v30  ;;  %1884 = vmatmul.f32.gmra.mxu3 %v1696_v31  ;;  %v884_v32 = vpop.f32.mrf.mxu0 }
 0x285   : > { %v1285_v33 = vpop.f32.mrf.mxu1 }
 0x286   : > { %v1286_v53 = vadd.f32 %v1285_v33, %v884_v32 }
 0x287   : > { %v1595_v54 = vpop.f32.mrf.mxu2  ;;  %v1837_v35 = vpop.f32.mrf.mxu3 }
 0x288   : > { %v1357_v37 = vadd.f32 %v2985_v62, %v1286_v53  ;;  %v1596_v39 = vadd.f32 %v3087_v56, %v1595_v54  ;;  %v1838_v40 = vadd.f32 %v3069_v59, %v1837_v35 }
 0x28a   : > { %v1421_v41 = vmax.f32 %v1357_v37, 0.0  ;;  %v1697_v42 = vmax.f32 %v1596_v39, 0.0  ;;  %1989 = vxpose.xlu1.b32.cont [13/16] (narrow) %v1838_v40, 8 }
 0x28c   : > { %1645 = vmatmul.f32.gmra.mxu2 %v1421_v41  ;;  %1887 = vmatmul.f32.gmra.mxu3 %v1697_v42  ;;  %v887_v43 = vpop.f32.mrf.mxu0 }
 0x28d   : > { %v1288_v44 = vpop.f32.mrf.mxu1 }
 0x28e   : > { %v1289_v45 = vadd.f32 %v1288_v44, %v887_v43 }
 0x28f   : > { %v1598_v48 = vpop.f32.mrf.mxu2  ;;  %v1840_v50 = vpop.f32.mrf.mxu3 }
 0x290   : > { %v1358_v51 = vadd.f32 %v2985_v62, %v1289_v45  ;;  %v1599_v52 = vadd.f32 %v3087_v56, %v1598_v48  ;;  %v1841_v55 = vadd.f32 %v3069_v59, %v1840_v50 }
 0x292   : > { %v1422_v6 = vmax.f32 %v1358_v51, 0.0  ;;  %v1698_v57 = vmax.f32 %v1599_v52, 0.0  ;;  %1990 = vxpose.xlu1.b32.cont [14/16] (narrow) %v1841_v55, 8 }
 0x294   : > { %1648 = vmatmul.f32.gmra.mxu2 %v1422_v6  ;;  %1890 = vmatmul.f32.gmra.mxu3 %v1698_v57  ;;  %v1460_v58 = vpop.f32.mrf.mxu0 }
 0x295   : > { %v1461_v63 = vadd.f32 %v3087_v56, %v1460_v58 }
 0x297   : > { %v1601_v0 = vpop.f32.mrf.mxu2  ;;  %v1843_v1 = vpop.f32.mrf.mxu3  ;;  %v1652_v3 = vmax.f32 %v1461_v63, 0.0 }
 0x298   : > { %v1602_v4 = vadd.f32 %v3087_v56, %v1601_v0  ;;  %v1844_v5 = vadd.f32 %v3069_v59, %v1843_v1 }
 0x299   : > { %1752 = vmatmul.f32.vlgmr.msrb.gmra.mxu1 %v1652_v3 }
 0x29a   : > { %v1699_v62 = vmax.f32 %v1602_v4, 0.0  ;;  %1991 = vxpose.xlu1.b32.cont [15/16] (narrow) %v1844_v5, 8 }
 0x29c   : > { %1893 = vmatmul.f32.gmra.mxu3 %v1699_v62 }
 0x29f   : > { %v1604_v7 = vpop.f32.mrf.mxu2  ;;  %v1846_v8 = vpop.f32.mrf.mxu3 }
 0x2a0   : > { %v1605_v9 = vadd.f32 %v3087_v56, %v1604_v7  ;;  %v1847_v11 = vadd.f32 %v3069_v59, %v1846_v8 }
 0x2a2   : > { %v1700_v13 = vmax.f32 %v1605_v9, 0.0  ;;  %1992 = vxpose.xlu1.b32.end [16/16] (narrow) %v1847_v11, 8 }
 0x2a4   : > { %1896 = vmatmul.f32.gmra.mxu3 %v1700_v13 }
 0x2a7   : > { %v1607_v15 = vpop.f32.mrf.mxu2  ;;  %v1849_v16 = vpop.f32.mrf.mxu3 }
 0x2a8   : > { %v1608_v17 = vadd.f32 %v3087_v56, %v1607_v15  ;;  %v1850_v18 = vadd.f32 %v3069_v59, %v1849_v16 }
 0x2aa   : > { %v1701_v19 = vmax.f32 %v1608_v17, 0.0  ;;  %2009 = vxpose.xlu2.b32.start [1/16] (narrow) %v1850_v18, 8 }
 0x2ac   : > { %1899 = vmatmul.f32.gmra.mxu3 %v1701_v19 }
 0x2af   : > { %v1610_v20 = vpop.f32.mrf.mxu2  ;;  %v1852_v21 = vpop.f32.mrf.mxu3 }
 0x2b0   : > { %v1611_v23 = vadd.f32 %v3087_v56, %v1610_v20  ;;  %v1853_v24 = vadd.f32 %v3069_v59, %v1852_v21 }
 0x2b2   : > { %v1702_v26 = vmax.f32 %v1611_v23, 0.0  ;;  %2010 = vxpose.xlu2.b32.cont [2/16] (narrow) %v1853_v24, 8 }
 0x2b4   : > { %1902 = vmatmul.f32.gmra.mxu3 %v1702_v26 }
 0x2b7   : > { %v1613_v28 = vpop.f32.mrf.mxu2  ;;  %v1855_v29 = vpop.f32.mrf.mxu3 }
 0x2b8   : > { %v1614_v30 = vadd.f32 %v3087_v56, %v1613_v28  ;;  %v1856_v31 = vadd.f32 %v3069_v59, %v1855_v29 }
 0x2ba   : > { %v1703_v32 = vmax.f32 %v1614_v30, 0.0  ;;  %2011 = vxpose.xlu2.b32.cont [3/16] (narrow) %v1856_v31, 8 }
 0x2bc   : > { %1905 = vmatmul.f32.gmra.mxu3 %v1703_v32 }
 0x2bf   : > { %v1616_v33 = vpop.f32.mrf.mxu2  ;;  %v1858_v53 = vpop.f32.mrf.mxu3 }
 0x2c0   : > { %v1617_v54 = vadd.f32 %v3087_v56, %v1616_v33  ;;  %v1859_v35 = vadd.f32 %v3069_v59, %v1858_v53 }
 0x2c2   : > { %v1704_v37 = vmax.f32 %v1617_v54, 0.0  ;;  %2012 = vxpose.xlu2.b32.cont [4/16] (narrow) %v1859_v35, 8 }
 0x2c4   : > { %1908 = vmatmul.f32.gmra.mxu3 %v1704_v37 }
 0x2c7   : > { %v1619_v39 = vpop.f32.mrf.mxu2  ;;  %v1861_v40 = vpop.f32.mrf.mxu3 }
 0x2c8   : > { %v1620_v41 = vadd.f32 %v3087_v56, %v1619_v39  ;;  %v1862_v42 = vadd.f32 %v3069_v59, %v1861_v40 }
 0x2ca   : > { %v1705_v43 = vmax.f32 %v1620_v41, 0.0  ;;  %2013 = vxpose.xlu2.b32.cont [5/16] (narrow) %v1862_v42, 8 }
 0x2cc   : > { %1911 = vmatmul.f32.gmra.mxu3 %v1705_v43 }
 0x2cf   : > { %v1622_v44 = vpop.f32.mrf.mxu2  ;;  %v1864_v45 = vpop.f32.mrf.mxu3 }
 0x2d0   : > { %v1623_v48 = vadd.f32 %v3087_v56, %v1622_v44  ;;  %v1865_v50 = vadd.f32 %v3069_v59, %v1864_v45 }
 0x2d2   : > { %v1706_v51 = vmax.f32 %v1623_v48, 0.0  ;;  %2014 = vxpose.xlu2.b32.cont [6/16] (narrow) %v1865_v50, 8 }
 0x2d4   : > { %1914 = vmatmul.f32.gmra.mxu3 %v1706_v51 }
 0x2d7   : > { %v1625_v52 = vpop.f32.mrf.mxu2  ;;  %v1867_v55 = vpop.f32.mrf.mxu3 }
 0x2d8   : > { %v1626_v6 = vadd.f32 %v3087_v56, %v1625_v52  ;;  %v1868_v57 = vadd.f32 %v3069_v59, %v1867_v55  ;;  %v1757_v55 = vadd.f32 %v3069_v59, %v2948_v2  ;;  %v1772_v2 = vadd.f32 %v3069_v59, %v2993_v60 }
 0x2d9   : > { %v1787_v60 = vadd.f32 %v3069_v59, %v3033_v61 }
 0x2da   : > { %v1707_v58 = vmax.f32 %v1626_v6, 0.0  ;;  %2015 = vxpose.xlu2.b32.cont [7/16] (narrow) %v1868_v57, 8  ;;  %v1763_v57 = vadd.f32 %v3069_v59, %v2964_v25  ;;  %v1778_v25 = vadd.f32 %v3069_v59, %v3009_v22  ;;  %v1793_v22 = vadd.f32 %v3069_v59, %v3051_v27 }
 0x2dc   : > { %1917 = vmatmul.f32.gmra.mxu3 %v1707_v58  ;;  %v1766_v58 = vadd.f32 %v3069_v59, %v2972_v36  ;;  %v1781_v36 = vadd.f32 %v3069_v59, %v3017_v34  ;;  %v1796_v34 = vadd.f32 %v3069_v59, %v3058_v38 }
 0x2df   : > { %v1628_v63 = vpop.f32.mrf.mxu2  ;;  %v1870_v0 = vpop.f32.mrf.mxu3 }
 0x2e0   : > { %v1629_v1 = vadd.f32 %v3087_v56, %v1628_v63  ;;  %v1871_v3 = vadd.f32 %v3069_v59, %v1870_v0  ;;  %v1769_v63 = vadd.f32 %v3069_v59, %v2980_v47  ;;  %v1784_v47 = vadd.f32 %v3069_v59, %v3025_v46 }
 0x2e2   : > { %v1708_v4 = vmax.f32 %v1629_v1, 0.0  ;;  %2016 = vxpose.xlu2.b32.cont [8/16] (narrow) %v1871_v3, 8  ;;  %v1799_v3 = vadd.f32 %v3069_v59, %v3062_v49 }
 0x2e4   : > { %1920 = vmatmul.f32.gmra.mxu3 %v1708_v4 }
 0x2e7   : > { %v1631_v5 = vpop.f32.mrf.mxu2  ;;  %v1873_v62 = vpop.f32.mrf.mxu3 }
 0x2e8   : > { %v1632_v7 = vadd.f32 %v3087_v56, %v1631_v5  ;;  %v1874_v8 = vadd.f32 %v3069_v59, %v1873_v62 }
 0x2ea   : > { %v1709_v9 = vmax.f32 %v1632_v7, 0.0  ;;  %2017 = vxpose.xlu2.b32.cont [9/16] (narrow) %v1874_v8, 8 }
 0x2ec   : > { %1923 = vmatmul.f32.gmra.mxu3 %v1709_v9 }
 0x2ef   : > { %v1634_v11 = vpop.f32.mrf.mxu2  ;;  %v1876_v13 = vpop.f32.mrf.mxu3 }
 0x2f0   : > { %v1635_v15 = vadd.f32 %v3087_v56, %v1634_v11  ;;  %v1877_v16 = vadd.f32 %v3069_v59, %v1876_v13 }
 0x2f2   : > { %v1710_v17 = vmax.f32 %v1635_v15, 0.0  ;;  %2018 = vxpose.xlu2.b32.cont [10/16] (narrow) %v1877_v16, 8 }
 0x2f4   : > { %1926 = vmatmul.f32.gmra.mxu3 %v1710_v17 }
 0x2f7   : > { %v1637_v18 = vpop.f32.mrf.mxu2  ;;  %v1879_v19 = vpop.f32.mrf.mxu3 }
 0x2f8   : > { %v1638_v20 = vadd.f32 %v3087_v56, %v1637_v18  ;;  %v1880_v21 = vadd.f32 %v3069_v59, %v1879_v19 }
 0x2fa   : > { %v1711_v23 = vmax.f32 %v1638_v20, 0.0  ;;  %2019 = vxpose.xlu2.b32.cont [11/16] (narrow) %v1880_v21, 8 }
 0x2fc   : > { %1929 = vmatmul.f32.gmra.mxu3 %v1711_v23 }
 0x2ff   : > { %v1640_v24 = vpop.f32.mrf.mxu2  ;;  %v1882_v26 = vpop.f32.mrf.mxu3 }
 0x300   : > { %v1641_v28 = vadd.f32 %v3087_v56, %v1640_v24  ;;  %v1883_v29 = vadd.f32 %v3069_v59, %v1882_v26 }
 0x302   : > { %v1712_v30 = vmax.f32 %v1641_v28, 0.0  ;;  %2020 = vxpose.xlu2.b32.cont [12/16] (narrow) %v1883_v29, 8 }
 0x304   : > { %1932 = vmatmul.f32.gmra.mxu3 %v1712_v30 }
 0x307   : > { %v1643_v31 = vpop.f32.mrf.mxu2  ;;  %v1885_v32 = vpop.f32.mrf.mxu3 }
 0x308   : > { %v1644_v33 = vadd.f32 %v3087_v56, %v1643_v31  ;;  %v1886_v53 = vadd.f32 %v3069_v59, %v1885_v32 }
 0x30a   : > { %v1713_v54 = vmax.f32 %v1644_v33, 0.0  ;;  %2021 = vxpose.xlu2.b32.cont [13/16] (narrow) %v1886_v53, 8 }
 0x30c   : > { %1935 = vmatmul.f32.gmra.mxu3 %v1713_v54  ;;  %v1993_v54 = vpop.trf.xlu1 }
 0x30f   : > { %v1646_v35 = vpop.f32.mrf.mxu2  ;;  %v1888_v37 = vpop.f32.mrf.mxu3 }
 0x310   : > { %v1647_v39 = vadd.f32 %v3087_v56, %v1646_v35  ;;  %v1889_v40 = vadd.f32 %v3069_v59, %v1888_v37  ;;  %v2087_v37 = vlaneseq }
 0x312   : > { %v1714_v41 = vmax.f32 %v1647_v39, 0.0  ;;  %2022 = vxpose.xlu2.b32.cont [14/16] (narrow) %v1889_v40, 8  ;;  %v2077_v39 = vrot.slane %v1993_v54, 7  ;;  %vm2089_vm4 = vcmp.lt.s32.totalorder %v2087_v37, 512 }
 0x314   : > { %1938 = vmatmul.f32.gmra.mxu3 %v1714_v41 }
 0x316   : > { %v1753_v43 = vpop.f32.mrf.mxu1 }
 0x317   : > { %v1649_v42 = vpop.f32.mrf.mxu2  ;;  %v1891_v45 = vpop.f32.mrf.mxu3  ;;  %v1754_v48 = vadd.f32 %v3069_v59, %v1753_v43 }
 0x318   : > { %v1650_v44 = vadd.f32 %v3087_v56, %v1649_v42  ;;  %v1892_v50 = vadd.f32 %v3069_v59, %v1891_v45  ;;  %v1760_v56 = vadd.f32 %v3069_v59, %v2956_v14  ;;  %v1775_v14 = vadd.f32 %v3069_v59, %v3001_v10 }
 0x319   : > { %1945 = vxpose.xlu0.b32.start [1/16] (narrow) %v1754_v48, 8  ;;  %v1790_v10 = vadd.f32 %v3069_v59, %v3041_v12 }
 0x31a   : > { %v1715_v51 = vmax.f32 %v1650_v44, 0.0  ;;  %2023 = vxpose.xlu2.b32.cont [15/16] (narrow) %v1892_v50, 8 }
 0x31c   : > { %1941 = vmatmul.f32.gmra.mxu3 %v1715_v51 }
 0x31f   : > { %v1894_v52 = vpop.f32.mrf.mxu3 }
 0x320   : > { %v1895_v6 = vadd.f32 %v3069_v59, %v1894_v52 }
 0x321   : > { %1946 = vxpose.xlu0.b32.cont [2/16] (narrow) %v1757_v55, 8 }
 0x322   : > { %2024 = vxpose.xlu2.b32.end [16/16] (narrow) %v1895_v6, 8 }
 0x327   : > { %v1897_v0 = vpop.f32.mrf.mxu3 }
 0x328   : > { %v1898_v4 = vadd.f32 %v3069_v59, %v1897_v0 }
 0x329   : > { %1947 = vxpose.xlu0.b32.cont [3/16] (narrow) %v1760_v56, 8 }
 0x32f   : > { %v1900_v1 = vpop.f32.mrf.mxu3 }
 0x330   : > { %v1901_v5 = vadd.f32 %v3069_v59, %v1900_v1 }
 0x331   : > { %1948 = vxpose.xlu0.b32.cont [4/16] (narrow) %v1763_v57, 8 }
 0x337   : > { %v1903_v46 = vpop.f32.mrf.mxu3 }
 0x338   : > { %v1904_v27 = vadd.f32 %v3069_v59, %v1903_v46 }
 0x339   : > { %1949 = vxpose.xlu0.b32.cont [5/16] (narrow) %v1766_v58, 8 }
 0x33f   : > { %v1906_v61 = vpop.f32.mrf.mxu3 }
 0x340   : > { %v1907_v38 = vadd.f32 %v3069_v59, %v1906_v61 }
 0x341   : > { %1950 = vxpose.xlu0.b32.cont [6/16] (narrow) %v1769_v63, 8 }
 0x343   : > { %v2025_v35 = vpop.trf.xlu2 }
 0x344   : > { %v2078_v40 = vrot.slane %v2025_v35, 6 }
 0x347   : > { %v1909_v12 = vpop.f32.mrf.mxu3 }
 0x348   : > { %v1910_v8 = vadd.f32 %v3069_v59, %v1909_v12 }
 0x349   : > { %1951 = vxpose.xlu0.b32.cont [7/16] (narrow) %v1772_v2, 8 }
 0x34f   : > { %v1912_v62 = vpop.f32.mrf.mxu3 }
 0x350   : > { %v1913_v9 = vadd.f32 %v3069_v59, %v1912_v62 }
 0x351   : > { %1952 = vxpose.xlu0.b32.cont [8/16] (narrow) %v1775_v14, 8 }
 0x357   : > { %v1915_v7 = vpop.f32.mrf.mxu3 }
 0x358   : > { %v1916_v13 = vadd.f32 %v3069_v59, %v1915_v7 }
 0x359   : > { %1953 = vxpose.xlu0.b32.cont [9/16] (narrow) %v1778_v25, 8 }
 0x35f   : > { %v1918_v49 = vpop.f32.mrf.mxu3 }
 0x360   : > { %v1919_v15 = vadd.f32 %v3069_v59, %v1918_v49 }
 0x361   : > { %1954 = vxpose.xlu0.b32.cont [10/16] (narrow) %v1781_v36, 8 }
 0x367   : > { %v1921_v11 = vpop.f32.mrf.mxu3 }
 0x368   : > { %v1922_v17 = vadd.f32 %v3069_v59, %v1921_v11 }
 0x369   : > { %1955 = vxpose.xlu0.b32.cont [11/16] (narrow) %v1784_v47, 8 }
 0x36f   : > { %v1924_v16 = vpop.f32.mrf.mxu3 }
 0x370   : > { %v1925_v19 = vadd.f32 %v3069_v59, %v1924_v16 }
 0x371   : > { %1956 = vxpose.xlu0.b32.cont [12/16] (narrow) %v1787_v60, 8 }
 0x377   : > { %v1927_v18 = vpop.f32.mrf.mxu3 }
 0x378   : > { %v1928_v21 = vadd.f32 %v3069_v59, %v1927_v18 }
 0x379   : > { %1957 = vxpose.xlu0.b32.cont [13/16] (narrow) %v1790_v10, 8 }
 0x37f   : > { %v1930_v20 = vpop.f32.mrf.mxu3 }
 0x380   : > { %v1931_v24 = vadd.f32 %v3069_v59, %v1930_v20 }
 0x381   : > { %1958 = vxpose.xlu0.b32.cont [14/16] (narrow) %v1793_v22, 8 }
 0x387   : > { %v1933_v23 = vpop.f32.mrf.mxu3 }
 0x388   : > { %v1934_v26 = vadd.f32 %v3069_v59, %v1933_v23 }
 0x389   : > { %1959 = vxpose.xlu0.b32.cont [15/16] (narrow) %v1796_v34, 8 }
 0x38f   : > { %v1936_v28 = vpop.f32.mrf.mxu3 }
 0x390   : > { %v1937_v29 = vadd.f32 %v3069_v59, %v1936_v28 }
 0x391   : > { %1960 = vxpose.xlu0.b32.end [16/16] (narrow) %v1799_v3, 8 }
 0x397   : > { %v1939_v30 = vpop.f32.mrf.mxu3 }
 0x398   : > { %v1940_v31 = vadd.f32 %v3069_v59, %v1939_v30 }
 0x399   : > { %2041 = vxpose.xlu0.b32.start [1/16] (narrow) %v1898_v4, 8 }
 0x39f   : > { %v1942_v32 = vpop.f32.mrf.mxu3 }
 0x3a0   : > { %v1943_v33 = vadd.f32 %v3069_v59, %v1942_v32 }
 0x3a1   : > { %2042 = vxpose.xlu0.b32.cont [2/16] (narrow) %v1901_v5, 8 }
 0x3a9   : > { %2043 = vxpose.xlu0.b32.cont [3/16] (narrow) %v1904_v27, 8 }
 0x3b1   : > { %2044 = vxpose.xlu0.b32.cont [4/16] (narrow) %v1907_v38, 8 }
 0x3b9   : > { %2045 = vxpose.xlu0.b32.cont [5/16] (narrow) %v1910_v8, 8 }
 0x3bd   : > { %v1961_v53 = vpop.trf.xlu0 }
 0x3be   : > { %v2081_v42 = vsel %vm2080_vm1, %v1961_v53, %v2077_v39 }
 0x3c1   : > { %2046 = vxpose.xlu0.b32.cont [6/16] (narrow) %v1913_v9, 8 }
 0x3c9   : > { %2047 = vxpose.xlu0.b32.cont [7/16] (narrow) %v1916_v13, 8 }
 0x3d1   : > { %2048 = vxpose.xlu0.b32.cont [8/16] (narrow) %v1919_v15, 8 }
 0x3d9   : > { %2049 = vxpose.xlu0.b32.cont [9/16] (narrow) %v1922_v17, 8 }
 0x3e1   : > { %2050 = vxpose.xlu0.b32.cont [10/16] (narrow) %v1925_v19, 8 }
 0x3e9   : > { %2051 = vxpose.xlu0.b32.cont [11/16] (narrow) %v1928_v21, 8 }
 0x3f1   : > { %2052 = vxpose.xlu0.b32.cont [12/16] (narrow) %v1931_v24, 8 }
 0x3f9   : > { %2053 = vxpose.xlu0.b32.cont [13/16] (narrow) %v1934_v26, 8 }
 0x401   : > { %2054 = vxpose.xlu0.b32.cont [14/16] (narrow) %v1937_v29, 8 }
 0x409   : > { %2055 = vxpose.xlu0.b32.cont [15/16] (narrow) %v1940_v31, 8 }
 0x411   : > { %2056 = vxpose.xlu0.b32.end [16/16] (narrow) %v1943_v33, 8 }
 0x43d   : > { %v2057_v41 = vpop.trf.xlu0 }
 0x43e   : > { %v2079_v59 = vrot.slane %v2057_v41, 5 }
 0x440   : > { %v2083_v43 = vsel %vm2082_vm2, %v2078_v40, %v2079_v59 }
 0x441   : > { %v2085_v44 = vsel %vm2084_vm3, %v2081_v42, %v2083_v43 }
 0x442   : > { %2091 = vst.msk [vmem:[%s342_s21] sm:$0xf] %vm2089_vm4, %v2085_v44 }
 0x443   : > { %2423 = shalt.err (!%p2420_p3)
}
 0x444   : > { %2352 = dma.vmem_to_hbm [thread:$0]  (%p2548_p5), %s2106_s22, 64, %s2108_s23, %s2093_s13  }
 0x445 PF: > { %p2358_p4 = scmp.ge.s32.totalorder %s2458_s12, 2  ;;  %s2119_s27 = sand.u32 1, %s2446_s30  }
 0x446   : > { %s2120_s17 = scalar_lea.sflag [#allocation3], %s2119_s27 }
 0x447   : > { %p2355_p7 = pnand %p2358_p4, %p2552_p6 }
 0x449   : > { %p2356_p8 = pneg %p2355_p7 }
 0x44b   : > { %2441 = dma.done.wait (%p2356_p8), %s2120_s17, 64  }
 0x44c   : > { %2443 = vsyncadd (%p2356_p8), %s2120_s17, 4294967232  ;;  %p19_p9 = scmp.ge.s32.totalorder %s2535_s15, 4   ;;  %s3245_s30 = smov %s2450_s10 }
 0x44d   : > { %s3246_s10 = smov %s2454_s11  ;;  %s3247_s11 = smov %s2546_s18 }
 0x44e   : > { %s3248_s12 = smov %s2535_s15  ;;  %21 = sbr.rel (!%p19_p9) target bundleno = 3 (0x3), region = 94 }
 0x453   :  { %2126 = vsyncpa [#allocation3], 1 }
 0x454   :  { %2128 = vsyncpa [#allocation3 + $0x1], 1 }

</bundles_post_ra>
